<compile_context>
chip_gen: v7x
topology: tpu7x:2x2x1
jax: 0.10.0
libtpu: 0.0.40
codegen_flags: <defaults>
</compile_context>

<pallas_src>
import functools
import math

import jax
import jax.numpy as jnp
from jax.experimental import pallas as pl
from jax.experimental.pallas import tpu as pltpu


def _round_up(x, m):
    return ((x + m - 1) // m) * m


def _layernorm(x, w, b, eps=1e-5):
    mu = jnp.mean(x, axis=-1, keepdims=True)
    xc = x - mu
    var = jnp.mean(xc * xc, axis=-1, keepdims=True)
    inv = jax.lax.rsqrt(var + eps)
    return xc * inv * w + b


def _encoder_layer_kernel(num_heads, tl, b_pad, b_real,
                          x_ref,
                          wqkv_ref, bqkv_ref,
                          wo_ref, bo_ref,
                          ln1w_ref, ln1b_ref,
                          w1_ref, b1_ref, w2_ref, b2_ref,
                          ln2w_ref, ln2b_ref,
                          o_ref,
                          attn_scr):
    """One post-norm encoder layer on a (tl*b_pad, E) row slab.

    Rows are ordered (slot, batch); attention runs per slot over the batch
    axis (faithful to the module's batch_first=False behavior).
    """
    f32 = jnp.float32
    bf16 = jnp.bfloat16
    E = x_ref.shape[-1]
    H = num_heads
    Dh = E // H
    rows = tl * b_pad

    xb = x_ref[...]                         # bf16 (rows, E) — MXU input as-is
    x = xb.astype(f32)                      # f32 residual path

    # ---- fused Q/K/V projection: one (rows, E) x (E, 3E) MXU pass ----------
    # (1/sqrt(Dh) is already folded into the Q columns / bias at init time.)
    qkv = jnp.dot(xb, wqkv_ref[...], preferred_element_type=f32) + bqkv_ref[...]

    # Key mask for padded batch entries (only when B was padded).
    mask_add = None
    if b_pad != b_real:
        key_idx = jax.lax.broadcasted_iota(jnp.int32, (1, 1, b_pad), 2)
        mask_add = jnp.where(key_idx < b_real, 0.0, -1e30).astype(f32)

    # ---- attention: static per-head loop, batched over all tl slots --------
    # Operands stay f32 (tiny key count); each head's output goes into a lane
    # slice of the VMEM scratch — no lane-axis concatenate.
    for h in range(H):
        q_h = qkv[:, h * Dh:(h + 1) * Dh].reshape(tl, b_pad, Dh)
        k_h = qkv[:, E + h * Dh:E + (h + 1) * Dh].reshape(tl, b_pad, Dh)
        v_h = qkv[:, 2 * E + h * Dh:2 * E + (h + 1) * Dh].reshape(tl, b_pad, Dh)
        s = jnp.einsum('lqd,lkd->lqk', q_h, k_h,
                       preferred_element_type=f32)       # (tl, b_pad, b_pad)
        if mask_add is not None:
            s = s + mask_add
        s = s - jnp.max(s, axis=-1, keepdims=True)
        p = jnp.exp(s)
        p = p / jnp.sum(p, axis=-1, keepdims=True)        # exact softmax denom
        o_h = jnp.einsum('lqk,lkd->lqd', p, v_h, preferred_element_type=f32)
        attn_scr[:, h * Dh:(h + 1) * Dh] = o_h.reshape(rows, Dh)

    attn = jnp.dot(attn_scr[...].astype(bf16), wo_ref[...],
                   preferred_element_type=f32) + bo_ref[...]

    # ---- residual + post-LayerNorm 1 (f32 vector math) ----------------------
    h1 = _layernorm(x + attn, ln1w_ref[...], ln1b_ref[...])

    # ---- feed-forward (GELU) ------------------------------------------------
    ff = jnp.dot(h1.astype(bf16), w1_ref[...], preferred_element_type=f32) + b1_ref[...]
    # TODO(synk): PyTorch F.gelu default is the exact erf form; tanh approximation here.
    ff = jax.nn.gelu(ff, approximate=True)
    ff = jnp.dot(ff.astype(bf16), w2_ref[...], preferred_element_type=f32) + b2_ref[...]

    # ---- residual + post-LayerNorm 2 ---------------------------------------
    h2 = _layernorm(h1 + ff, ln2w_ref[...], ln2b_ref[...])
    o_ref[...] = h2.astype(o_ref.dtype)


def _vmem_capacity_bytes():
    """Physical VMEM per TensorCore (generation-aware); conservative fallback."""
    try:
        info = pltpu.get_tpu_info()
        cap = getattr(info, "vmem_capacity_bytes", None)
        if cap:
            return int(cap)
    except Exception:
        pass
    return 64 * 1024 * 1024   # assume v7x-class if unknown


def _choose_tiling(L, b_pad, E, Hd):
    """Pick the L-tile and scoped VMEM limit from the chip's VMEM capacity.

    v5e/v6e (128 MiB) get a ~77 MiB scoped limit and tiles up to ~2048 rows;
    v7x (64 MiB) gets ~38 MiB and proportionally smaller tiles.  tl is also
    capped so the grid has at least 2 parallel steps (megacore / pipelining).
    """
    cap = _vmem_capacity_bytes()
    vmem_limit = min(int(cap * 0.6), 96 * 1024 * 1024)

    weight_bytes = (3 * E * E + E * E + 2 * E * Hd) * 2 + (9 * E + Hd) * 4
    per_row_bytes = (
        2 * 2 * (E * 2)        # in/out activation blocks (bf16, double-buffered)
        + 4 * (3 * E)          # fused qkv (f32)
        + 4 * E                # attention scratch (f32)
        + 4 * Hd               # FFN intermediate (f32)
        + 4 * 4 * E            # residual / LayerNorm temps (f32)
        + 4 * 2 * b_pad        # per-head scores / probs
    )
    budget = max(vmem_limit - weight_bytes - (4 << 20), 1 << 20)
    rows_cap = max(b_pad, budget // per_row_bytes)
    rows_target = min(2048, rows_cap)
    tl = max(1, int(rows_target) // b_pad)
    if L >= 2:
        tl = min(tl, max(1, (L + 1) // 2))   # >=2 grid steps
    tl = min(tl, L)
    return tl, vmem_limit


def transformer_encoder_layer(x2d, params, *, num_heads, tl, b_pad, b_real,
                              vmem_limit):
    """One encoder layer.  x2d: (Lp*Bp, E) bf16, rows ordered (slot, batch)."""
    rows, E = x2d.shape
    Hd = params["w1_t"].shape[1]
    block_rows = tl * b_pad
    n_blocks = rows // block_rows

    def wspec(shape):
        # Weights never change across the grid: single-buffer them.
        return pl.BlockSpec(shape, lambda i: (0, 0), pipeline_mode=pl.Buffered(1))

    in_specs = [
        pl.BlockSpec((block_rows, E), lambda i: (i, 0)),   # activations
        wspec((E, 3 * E)), wspec((1, 3 * E)),              # fused qkv proj
        wspec((E, E)), wspec((1, E)),                      # out proj
        wspec((1, E)), wspec((1, E)),                      # ln1
        wspec((E, Hd)), wspec((1, Hd)),                    # linear1
        wspec((Hd, E)), wspec((1, E)),                     # linear2
        wspec((1, E)), wspec((1, E)),                      # ln2
    ]
    kernel = functools.partial(_encoder_layer_kernel, num_heads, tl, b_pad, b_real)

    weight_bytes = (3 * E * E + E * E + 2 * E * Hd) * 2 + (9 * E + Hd) * 4
    flops = rows * (8 * E * E + 4 * E * Hd + 4 * b_pad * E)
    cost = pl.CostEstimate(
        flops=int(flops),
        transcendentals=int(rows * Hd + rows * b_pad * num_heads),
        bytes_accessed=int(2 * rows * E * 2 + weight_bytes),
    )

    return pl.pallas_call(
        kernel,
        out_shape=jax.ShapeDtypeStruct((rows, E), x2d.dtype),
        grid=(n_blocks,),
        in_specs=in_specs,
        out_specs=pl.BlockSpec((block_rows, E), lambda i: (i, 0)),
        scratch_shapes=[pltpu.VMEM((block_rows, E), jnp.float32)],
        input_output_aliases={0: 0},
        compiler_params=pltpu.CompilerParams(
            dimension_semantics=("parallel",),
            vmem_limit_bytes=int(vmem_limit),
        ),
        cost_estimate=cost,
    )(x2d,
      params["wqkv_t"], params["bqkv"],
      params["wo_t"], params["bo"],
      params["ln1w"], params["ln1b"],
      params["w1_t"], params["b1"], params["w2_t"], params["b2"],
      params["ln2w"], params["ln2b"])


def init_params(key, num_classes, emb_dim, hidden_dim, num_layers, num_heads):
    keys = jax.random.split(key, 1 + num_layers)
    cls_tokens = jax.random.normal(keys[0], (1, num_classes, emb_dim), jnp.float32)
    E, Hd = emb_dim, hidden_dim
    scale = 1.0 / math.sqrt(E // num_heads)

    def _linear(kw, kb, fan_in, fan_out):
        w = 0.02 * jax.random.normal(kw, (fan_out, fan_in), jnp.float32)
        b = 0.02 * jax.random.normal(kb, (fan_out,), jnp.float32)
        return w, b

    layers = []
    for l in range(num_layers):
        k = jax.random.split(keys[1 + l], 12)
        wq, bq = _linear(k[0], k[1], E, E)
        wk, bk = _linear(k[2], k[3], E, E)
        wv, bv = _linear(k[4], k[5], E, E)
        wo, bo = _linear(k[6], k[7], E, E)
        w1, b1 = _linear(k[8], k[9], E, Hd)
        w2, b2 = _linear(k[10], k[11], Hd, E)
        # Fused (E, 3E) QKV weight (PyTorch Linear: x @ W.T + b), pre-transposed
        # for the MXU; 1/sqrt(Dh) folded into the Q columns in f32 before the
        # bf16 cast.
        wqkv_t = jnp.concatenate([scale * wq.T, wk.T, wv.T], axis=1)
        bqkv = jnp.concatenate([scale * bq, bk, bv]).reshape(1, -1)
        layers.append(dict(
            wqkv_t=wqkv_t.astype(jnp.bfloat16), bqkv=bqkv,
            wo_t=wo.T.astype(jnp.bfloat16), bo=bo.reshape(1, -1),
            ln1w=jnp.ones((1, E), jnp.float32), ln1b=jnp.zeros((1, E), jnp.float32),
            w1_t=w1.T.astype(jnp.bfloat16), b1=b1.reshape(1, -1),
            w2_t=w2.T.astype(jnp.bfloat16), b2=b2.reshape(1, -1),
            ln2w=jnp.ones((1, E), jnp.float32), ln2b=jnp.zeros((1, E), jnp.float32),
        ))
    return cls_tokens, layers


def mask_transformer_forward(x, cls_tokens, layers, num_heads):
    """x: (B, N, E).  Returns (z, c) = ((B, N, E), (B, num_classes, E))."""
    B, N, E = x.shape
    C = cls_tokens.shape[1]
    L = C + N
    Hd = layers[0]["w1_t"].shape[1]

    cls = jnp.broadcast_to(cls_tokens.astype(x.dtype), (B, C, E))
    xc = jnp.concatenate([cls, x], axis=1)          # (B, L, E)
    # batch_first=False semantics: seq axis = original batch B, batch axis = L.
    x_lbe = jnp.transpose(xc, (1, 0, 2))            # (L, B, E)

    # Pad batch (attention sequence) to a sublane multiple of 8 and slots to a
    # multiple of the tile; padded slots are independent, padded batch entries
    # are masked out of attention inside the kernel.
    Bp = _round_up(B, 8)
    tl, vmem_limit = _choose_tiling(L, Bp, E, Hd)
    Lp = _round_up(L, tl)
    x_lbe = jnp.pad(x_lbe, ((0, Lp - L), (0, Bp - B), (0, 0)))
    # Inter-layer activations carried in bf16 (halves HBM round-trip traffic);
    # all residual / LayerNorm / softmax math is f32 inside the kernel.
    x2d = x_lbe.reshape(Lp * Bp, E).astype(jnp.bfloat16)

    for p in layers:
        x2d = transformer_encoder_layer(x2d, p, num_heads=num_heads,
                                        tl=tl, b_pad=Bp, b_real=B,
                                        vmem_limit=vmem_limit)

    out = x2d.reshape(Lp, Bp, E)[:L, :B].astype(x.dtype)   # strip padding
    out = jnp.transpose(out, (1, 0, 2))                    # (B, L, E)
    c = out[:, :C]
    z = out[:, C:]
    return z, c


if __name__ == "__main__":
    num_classes = 4
    emb_dim = 32
    hidden_dim = 64
    num_layers = 2
    num_heads = 4
    batch, n_patches = 2, 8

    key = jax.random.PRNGKey(0)
    k_param, k_x = jax.random.split(key)
    cls_tokens, layer_params = init_params(
        k_param, num_classes, emb_dim, hidden_dim, num_layers, num_heads)
    x = jax.random.normal(k_x, (batch, n_patches, emb_dim), jnp.float32)

    fwd = jax.jit(functools.partial(mask_transformer_forward, num_heads=num_heads))
    z, c = fwd(x, cls_tokens, layer_params)
    jax.block_until_ready((z, c))
    assert z.shape == (batch, n_patches, emb_dim)
    assert c.shape == (batch, num_classes, emb_dim)
    assert bool(jnp.all(jnp.isfinite(z))) and bool(jnp.all(jnp.isfinite(c)))
    print("KERNEL_OK")
</pallas_src>

<mosaic_0001>
module attributes {stable_mosaic.version = 11 : i64} {
  func.func @_encoder_layer_kernel(%arg0: i32, %arg1: memref<48x32xbf16, #tpu.memory_space<vmem>>, %arg2: memref<32x96xbf16, #tpu.memory_space<vmem>>, %arg3: memref<1x96xf32, #tpu.memory_space<vmem>>, %arg4: memref<32x32xbf16, #tpu.memory_space<vmem>>, %arg5: memref<1x32xf32, #tpu.memory_space<vmem>>, %arg6: memref<1x32xf32, #tpu.memory_space<vmem>>, %arg7: memref<1x32xf32, #tpu.memory_space<vmem>>, %arg8: memref<32x64xbf16, #tpu.memory_space<vmem>>, %arg9: memref<1x64xf32, #tpu.memory_space<vmem>>, %arg10: memref<64x32xbf16, #tpu.memory_space<vmem>>, %arg11: memref<1x32xf32, #tpu.memory_space<vmem>>, %arg12: memref<1x32xf32, #tpu.memory_space<vmem>>, %arg13: memref<1x32xf32, #tpu.memory_space<vmem>>, %arg14: memref<48x32xbf16, #tpu.memory_space<vmem>>, %arg15: memref<48x32xf32, #tpu.memory_space<vmem>>) attributes {dimension_semantics = [#tpu.dimension_semantics<parallel>], iteration_bounds = array<i64: 2>, scalar_prefetch = 0 : i64, scratch_operands = 1 : i64, tpu.core_type = #tpu.core_type<tc>, window_params = [{transform_indices = @transform_0, window_bounds = array<i64: 48, 32>}, {pipeline_mode = #tpu.pipeline_mode<synchronous>, transform_indices = @transform_1, window_bounds = array<i64: 32, 96>}, {pipeline_mode = #tpu.pipeline_mode<synchronous>, transform_indices = @transform_2, window_bounds = array<i64: 1, 96>}, {pipeline_mode = #tpu.pipeline_mode<synchronous>, transform_indices = @transform_3, window_bounds = array<i64: 32, 32>}, {pipeline_mode = #tpu.pipeline_mode<synchronous>, transform_indices = @transform_4, window_bounds = array<i64: 1, 32>}, {pipeline_mode = #tpu.pipeline_mode<synchronous>, transform_indices = @transform_5, window_bounds = array<i64: 1, 32>}, {pipeline_mode = #tpu.pipeline_mode<synchronous>, transform_indices = @transform_6, window_bounds = array<i64: 1, 32>}, {pipeline_mode = #tpu.pipeline_mode<synchronous>, transform_indices = @transform_7, window_bounds = array<i64: 32, 64>}, {pipeline_mode = #tpu.pipeline_mode<synchronous>, transform_indices = @transform_8, window_bounds = array<i64: 1, 64>}, {pipeline_mode = #tpu.pipeline_mode<synchronous>, transform_indices = @transform_9, window_bounds = array<i64: 64, 32>}, {pipeline_mode = #tpu.pipeline_mode<synchronous>, transform_indices = @transform_10, window_bounds = array<i64: 1, 32>}, {pipeline_mode = #tpu.pipeline_mode<synchronous>, transform_indices = @transform_11, window_bounds = array<i64: 1, 32>}, {pipeline_mode = #tpu.pipeline_mode<synchronous>, transform_indices = @transform_12, window_bounds = array<i64: 1, 32>}, {transform_indices = @transform_13, window_bounds = array<i64: 48, 32>}]} {
    %c0 = arith.constant 0 : index
    %c0_0 = arith.constant 0 : index
    %0 = vector.load %arg1[%c0, %c0_0] : memref<48x32xbf16, #tpu.memory_space<vmem>>, vector<48x32xbf16>
    %1 = arith.extf %0 : vector<48x32xbf16> to vector<48x32xf32>
    %c0_1 = arith.constant 0 : index
    %c0_2 = arith.constant 0 : index
    %2 = vector.load %arg2[%c0_1, %c0_2] : memref<32x96xbf16, #tpu.memory_space<vmem>>, vector<32x96xbf16>
    %cst = arith.constant dense<0.000000e+00> : vector<48x96xf32>
    %3 = tpu.matmul %0, %2, %cst {dimension_numbers = #tpu.dot_dimension_numbers<[1], [0], [0], [1], [0, 0, 1, 1], [], []>} : vector<48x32xbf16>, vector<32x96xbf16>, vector<48x96xf32> -> vector<48x96xf32>
    %c0_3 = arith.constant 0 : index
    %c0_4 = arith.constant 0 : index
    %4 = vector.load %arg3[%c0_3, %c0_4] : memref<1x96xf32, #tpu.memory_space<vmem>>, vector<1x96xf32>
    %5 = vector.broadcast %4 : vector<1x96xf32> to vector<48x96xf32>
    %6 = arith.addf %3, %5 : vector<48x96xf32>
    %7 = tpu.iota {dimensions = array<i32: 2>} : vector<1x1x8xi32>
    %c2_i32 = arith.constant 2 : i32
    %8 = vector.broadcast %c2_i32 : i32 to vector<1x1x8xi32>
    %9 = arith.cmpi slt, %7, %8 : vector<1x1x8xi32>
    %cst_5 = arith.constant 0.000000e+00 : f32
    %cst_6 = arith.constant -1.000000e+30 : f32
    %10 = vector.broadcast %cst_5 : f32 to vector<1x1x8xf32>
    %11 = vector.broadcast %cst_6 : f32 to vector<1x1x8xf32>
    %12 = arith.select %9, %10, %11 : vector<1x1x8xi1>, vector<1x1x8xf32>
    %13 = vector.extract_strided_slice %6 {offsets = [0, 0], sizes = [48, 8], strides = [1, 1]} : vector<48x96xf32> to vector<48x8xf32>
    %14 = vector.shape_cast %13 : vector<48x8xf32> to vector<6x8x8xf32>
    %15 = vector.extract_strided_slice %6 {offsets = [0, 32], sizes = [48, 8], strides = [1, 1]} : vector<48x96xf32> to vector<48x8xf32>
    %16 = vector.shape_cast %15 : vector<48x8xf32> to vector<6x8x8xf32>
    %17 = vector.extract_strided_slice %6 {offsets = [0, 64], sizes = [48, 8], strides = [1, 1]} : vector<48x96xf32> to vector<48x8xf32>
    %18 = vector.shape_cast %17 : vector<48x8xf32> to vector<6x8x8xf32>
    "tpu.trace_start"() <{level = 10 : i32, message = "lqd,lkd->lqk"}> : () -> ()
    %cst_7 = arith.constant dense<0.000000e+00> : vector<6x8x8xf32>
    %19 = tpu.matmul %14, %16, %cst_7 {dimension_numbers = #tpu.dot_dimension_numbers<[2], [2], [1], [1], [0, 0, 0, 1, 1, 1], [0], [0]>} : vector<6x8x8xf32>, vector<6x8x8xf32>, vector<6x8x8xf32> -> vector<6x8x8xf32>
    "tpu.trace_stop"() : () -> ()
    %20 = vector.broadcast %12 : vector<1x1x8xf32> to vector<6x8x8xf32>
    %21 = arith.addf %19, %20 : vector<6x8x8xf32>
    %cst_8 = arith.constant dense<0xFF800000> : vector<6x8xf32>
    %22 = vector.multi_reduction <maximumf>, %21, %cst_8 [2] : vector<6x8x8xf32> to vector<6x8xf32>
    %23 = vector.shape_cast %22 : vector<6x8xf32> to vector<6x8x1xf32>
    %24 = vector.broadcast %23 : vector<6x8x1xf32> to vector<6x8x8xf32>
    %25 = arith.subf %21, %24 : vector<6x8x8xf32>
    %26 = math.exp %25 : vector<6x8x8xf32>
    %cst_9 = arith.constant dense<0.000000e+00> : vector<6x8xf32>
    %27 = vector.multi_reduction <add>, %26, %cst_9 [2] : vector<6x8x8xf32> to vector<6x8xf32>
    %28 = vector.shape_cast %27 : vector<6x8xf32> to vector<6x8x1xf32>
    %29 = vector.broadcast %28 : vector<6x8x1xf32> to vector<6x8x8xf32>
    %30 = arith.divf %26, %29 : vector<6x8x8xf32>
    "tpu.trace_start"() <{level = 10 : i32, message = "lqk,lkd->lqd"}> : () -> ()
    %cst_10 = arith.constant dense<0.000000e+00> : vector<6x8x8xf32>
    %31 = tpu.matmul %30, %18, %cst_10 {dimension_numbers = #tpu.dot_dimension_numbers<[2], [1], [1], [2], [0, 0, 0, 1, 1, 2], [0], [0]>} : vector<6x8x8xf32>, vector<6x8x8xf32>, vector<6x8x8xf32> -> vector<6x8x8xf32>
    "tpu.trace_stop"() : () -> ()
    %32 = vector.shape_cast %31 : vector<6x8x8xf32> to vector<48x8xf32>
    %c0_11 = arith.constant 0 : index
    %c0_12 = arith.constant 0 : index
    %33 = vector.load %arg15[%c0_11, %c0_12] : memref<48x32xf32, #tpu.memory_space<vmem>>, vector<48x8xf32>
    tpu.vector_store %arg15[%c0_11, %c0_12], %32 {strides = array<i32>} : memref<48x32xf32, #tpu.memory_space<vmem>>, vector<48x8xf32>,
    %34 = vector.extract_strided_slice %6 {offsets = [0, 8], sizes = [48, 8], strides = [1, 1]} : vector<48x96xf32> to vector<48x8xf32>
    %35 = vector.shape_cast %34 : vector<48x8xf32> to vector<6x8x8xf32>
    %36 = vector.extract_strided_slice %6 {offsets = [0, 40], sizes = [48, 8], strides = [1, 1]} : vector<48x96xf32> to vector<48x8xf32>
    %37 = vector.shape_cast %36 : vector<48x8xf32> to vector<6x8x8xf32>
    %38 = vector.extract_strided_slice %6 {offsets = [0, 72], sizes = [48, 8], strides = [1, 1]} : vector<48x96xf32> to vector<48x8xf32>
    %39 = vector.shape_cast %38 : vector<48x8xf32> to vector<6x8x8xf32>
    "tpu.trace_start"() <{level = 10 : i32, message = "lqd,lkd->lqk"}> : () -> ()
    %cst_13 = arith.constant dense<0.000000e+00> : vector<6x8x8xf32>
    %40 = tpu.matmul %35, %37, %cst_13 {dimension_numbers = #tpu.dot_dimension_numbers<[2], [2], [1], [1], [0, 0, 0, 1, 1, 1], [0], [0]>} : vector<6x8x8xf32>, vector<6x8x8xf32>, vector<6x8x8xf32> -> vector<6x8x8xf32>
    "tpu.trace_stop"() : () -> ()
    %41 = vector.broadcast %12 : vector<1x1x8xf32> to vector<6x8x8xf32>
    %42 = arith.addf %40, %41 : vector<6x8x8xf32>
    %cst_14 = arith.constant dense<0xFF800000> : vector<6x8xf32>
    %43 = vector.multi_reduction <maximumf>, %42, %cst_14 [2] : vector<6x8x8xf32> to vector<6x8xf32>
    %44 = vector.shape_cast %43 : vector<6x8xf32> to vector<6x8x1xf32>
    %45 = vector.broadcast %44 : vector<6x8x1xf32> to vector<6x8x8xf32>
    %46 = arith.subf %42, %45 : vector<6x8x8xf32>
    %47 = math.exp %46 : vector<6x8x8xf32>
    %cst_15 = arith.constant dense<0.000000e+00> : vector<6x8xf32>
    %48 = vector.multi_reduction <add>, %47, %cst_15 [2] : vector<6x8x8xf32> to vector<6x8xf32>
    %49 = vector.shape_cast %48 : vector<6x8xf32> to vector<6x8x1xf32>
    %50 = vector.broadcast %49 : vector<6x8x1xf32> to vector<6x8x8xf32>
    %51 = arith.divf %47, %50 : vector<6x8x8xf32>
    "tpu.trace_start"() <{level = 10 : i32, message = "lqk,lkd->lqd"}> : () -> ()
    %cst_16 = arith.constant dense<0.000000e+00> : vector<6x8x8xf32>
    %52 = tpu.matmul %51, %39, %cst_16 {dimension_numbers = #tpu.dot_dimension_numbers<[2], [1], [1], [2], [0, 0, 0, 1, 1, 2], [0], [0]>} : vector<6x8x8xf32>, vector<6x8x8xf32>, vector<6x8x8xf32> -> vector<6x8x8xf32>
    "tpu.trace_stop"() : () -> ()
    %53 = vector.shape_cast %52 : vector<6x8x8xf32> to vector<48x8xf32>
    %c0_17 = arith.constant 0 : index
    %c8 = arith.constant 8 : index
    %54 = vector.load %arg15[%c0_17, %c8] : memref<48x32xf32, #tpu.memory_space<vmem>>, vector<48x8xf32>
    tpu.vector_store %arg15[%c0_17, %c8], %53 {strides = array<i32>} : memref<48x32xf32, #tpu.memory_space<vmem>>, vector<48x8xf32>,
    %55 = vector.extract_strided_slice %6 {offsets = [0, 16], sizes = [48, 8], strides = [1, 1]} : vector<48x96xf32> to vector<48x8xf32>
    %56 = vector.shape_cast %55 : vector<48x8xf32> to vector<6x8x8xf32>
    %57 = vector.extract_strided_slice %6 {offsets = [0, 48], sizes = [48, 8], strides = [1, 1]} : vector<48x96xf32> to vector<48x8xf32>
    %58 = vector.shape_cast %57 : vector<48x8xf32> to vector<6x8x8xf32>
    %59 = vector.extract_strided_slice %6 {offsets = [0, 80], sizes = [48, 8], strides = [1, 1]} : vector<48x96xf32> to vector<48x8xf32>
    %60 = vector.shape_cast %59 : vector<48x8xf32> to vector<6x8x8xf32>
    "tpu.trace_start"() <{level = 10 : i32, message = "lqd,lkd->lqk"}> : () -> ()
    %cst_18 = arith.constant dense<0.000000e+00> : vector<6x8x8xf32>
    %61 = tpu.matmul %56, %58, %cst_18 {dimension_numbers = #tpu.dot_dimension_numbers<[2], [2], [1], [1], [0, 0, 0, 1, 1, 1], [0], [0]>} : vector<6x8x8xf32>, vector<6x8x8xf32>, vector<6x8x8xf32> -> vector<6x8x8xf32>
    "tpu.trace_stop"() : () -> ()
    %62 = vector.broadcast %12 : vector<1x1x8xf32> to vector<6x8x8xf32>
    %63 = arith.addf %61, %62 : vector<6x8x8xf32>
    %cst_19 = arith.constant dense<0xFF800000> : vector<6x8xf32>
    %64 = vector.multi_reduction <maximumf>, %63, %cst_19 [2] : vector<6x8x8xf32> to vector<6x8xf32>
    %65 = vector.shape_cast %64 : vector<6x8xf32> to vector<6x8x1xf32>
    %66 = vector.broadcast %65 : vector<6x8x1xf32> to vector<6x8x8xf32>
    %67 = arith.subf %63, %66 : vector<6x8x8xf32>
    %68 = math.exp %67 : vector<6x8x8xf32>
    %cst_20 = arith.constant dense<0.000000e+00> : vector<6x8xf32>
    %69 = vector.multi_reduction <add>, %68, %cst_20 [2] : vector<6x8x8xf32> to vector<6x8xf32>
    %70 = vector.shape_cast %69 : vector<6x8xf32> to vector<6x8x1xf32>
    %71 = vector.broadcast %70 : vector<6x8x1xf32> to vector<6x8x8xf32>
    %72 = arith.divf %68, %71 : vector<6x8x8xf32>
    "tpu.trace_start"() <{level = 10 : i32, message = "lqk,lkd->lqd"}> : () -> ()
    %cst_21 = arith.constant dense<0.000000e+00> : vector<6x8x8xf32>
    %73 = tpu.matmul %72, %60, %cst_21 {dimension_numbers = #tpu.dot_dimension_numbers<[2], [1], [1], [2], [0, 0, 0, 1, 1, 2], [0], [0]>} : vector<6x8x8xf32>, vector<6x8x8xf32>, vector<6x8x8xf32> -> vector<6x8x8xf32>
    "tpu.trace_stop"() : () -> ()
    %74 = vector.shape_cast %73 : vector<6x8x8xf32> to vector<48x8xf32>
    %c0_22 = arith.constant 0 : index
    %c16 = arith.constant 16 : index
    %75 = vector.load %arg15[%c0_22, %c16] : memref<48x32xf32, #tpu.memory_space<vmem>>, vector<48x8xf32>
    tpu.vector_store %arg15[%c0_22, %c16], %74 {strides = array<i32>} : memref<48x32xf32, #tpu.memory_space<vmem>>, vector<48x8xf32>,
    %76 = vector.extract_strided_slice %6 {offsets = [0, 24], sizes = [48, 8], strides = [1, 1]} : vector<48x96xf32> to vector<48x8xf32>
    %77 = vector.shape_cast %76 : vector<48x8xf32> to vector<6x8x8xf32>
    %78 = vector.extract_strided_slice %6 {offsets = [0, 56], sizes = [48, 8], strides = [1, 1]} : vector<48x96xf32> to vector<48x8xf32>
    %79 = vector.shape_cast %78 : vector<48x8xf32> to vector<6x8x8xf32>
    %80 = vector.extract_strided_slice %6 {offsets = [0, 88], sizes = [48, 8], strides = [1, 1]} : vector<48x96xf32> to vector<48x8xf32>
    %81 = vector.shape_cast %80 : vector<48x8xf32> to vector<6x8x8xf32>
    "tpu.trace_start"() <{level = 10 : i32, message = "lqd,lkd->lqk"}> : () -> ()
    %cst_23 = arith.constant dense<0.000000e+00> : vector<6x8x8xf32>
    %82 = tpu.matmul %77, %79, %cst_23 {dimension_numbers = #tpu.dot_dimension_numbers<[2], [2], [1], [1], [0, 0, 0, 1, 1, 1], [0], [0]>} : vector<6x8x8xf32>, vector<6x8x8xf32>, vector<6x8x8xf32> -> vector<6x8x8xf32>
    "tpu.trace_stop"() : () -> ()
    %83 = vector.broadcast %12 : vector<1x1x8xf32> to vector<6x8x8xf32>
    %84 = arith.addf %82, %83 : vector<6x8x8xf32>
    %cst_24 = arith.constant dense<0xFF800000> : vector<6x8xf32>
    %85 = vector.multi_reduction <maximumf>, %84, %cst_24 [2] : vector<6x8x8xf32> to vector<6x8xf32>
    %86 = vector.shape_cast %85 : vector<6x8xf32> to vector<6x8x1xf32>
    %87 = vector.broadcast %86 : vector<6x8x1xf32> to vector<6x8x8xf32>
    %88 = arith.subf %84, %87 : vector<6x8x8xf32>
    %89 = math.exp %88 : vector<6x8x8xf32>
    %cst_25 = arith.constant dense<0.000000e+00> : vector<6x8xf32>
    %90 = vector.multi_reduction <add>, %89, %cst_25 [2] : vector<6x8x8xf32> to vector<6x8xf32>
    %91 = vector.shape_cast %90 : vector<6x8xf32> to vector<6x8x1xf32>
    %92 = vector.broadcast %91 : vector<6x8x1xf32> to vector<6x8x8xf32>
    %93 = arith.divf %89, %92 : vector<6x8x8xf32>
    "tpu.trace_start"() <{level = 10 : i32, message = "lqk,lkd->lqd"}> : () -> ()
    %cst_26 = arith.constant dense<0.000000e+00> : vector<6x8x8xf32>
    %94 = tpu.matmul %93, %81, %cst_26 {dimension_numbers = #tpu.dot_dimension_numbers<[2], [1], [1], [2], [0, 0, 0, 1, 1, 2], [0], [0]>} : vector<6x8x8xf32>, vector<6x8x8xf32>, vector<6x8x8xf32> -> vector<6x8x8xf32>
    "tpu.trace_stop"() : () -> ()
    %95 = vector.shape_cast %94 : vector<6x8x8xf32> to vector<48x8xf32>
    %c0_27 = arith.constant 0 : index
    %c24 = arith.constant 24 : index
    %96 = vector.load %arg15[%c0_27, %c24] : memref<48x32xf32, #tpu.memory_space<vmem>>, vector<48x8xf32>
    tpu.vector_store %arg15[%c0_27, %c24], %95 {strides = array<i32>} : memref<48x32xf32, #tpu.memory_space<vmem>>, vector<48x8xf32>,
    %c0_28 = arith.constant 0 : index
    %c0_29 = arith.constant 0 : index
    %97 = vector.load %arg15[%c0_28, %c0_29] : memref<48x32xf32, #tpu.memory_space<vmem>>, vector<48x32xf32>
    %98 = arith.truncf %97 : vector<48x32xf32> to vector<48x32xbf16>
    %c0_30 = arith.constant 0 : index
    %c0_31 = arith.constant 0 : index
    %99 = vector.load %arg4[%c0_30, %c0_31] : memref<32x32xbf16, #tpu.memory_space<vmem>>, vector<32x32xbf16>
    %cst_32 = arith.constant dense<0.000000e+00> : vector<48x32xf32>
    %100 = tpu.matmul %98, %99, %cst_32 {dimension_numbers = #tpu.dot_dimension_numbers<[1], [0], [0], [1], [0, 0, 1, 1], [], []>} : vector<48x32xbf16>, vector<32x32xbf16>, vector<48x32xf32> -> vector<48x32xf32>
    %c0_33 = arith.constant 0 : index
    %c0_34 = arith.constant 0 : index
    %101 = vector.load %arg5[%c0_33, %c0_34] : memref<1x32xf32, #tpu.memory_space<vmem>>, vector<1x32xf32>
    %102 = vector.broadcast %101 : vector<1x32xf32> to vector<48x32xf32>
    %103 = arith.addf %100, %102 : vector<48x32xf32>
    %104 = arith.addf %1, %103 : vector<48x32xf32>
    %c0_35 = arith.constant 0 : index
    %c0_36 = arith.constant 0 : index
    %105 = vector.load %arg6[%c0_35, %c0_36] : memref<1x32xf32, #tpu.memory_space<vmem>>, vector<1x32xf32>
    %c0_37 = arith.constant 0 : index
    %c0_38 = arith.constant 0 : index
    %106 = vector.load %arg7[%c0_37, %c0_38] : memref<1x32xf32, #tpu.memory_space<vmem>>, vector<1x32xf32>
    %cst_39 = arith.constant dense<0.000000e+00> : vector<48xf32>
    %107 = vector.multi_reduction <add>, %104, %cst_39 [1] : vector<48x32xf32> to vector<48xf32>
    %108 = vector.shape_cast %107 : vector<48xf32> to vector<48x1xf32>
    %cst_40 = arith.constant 3.200000e+01 : f32
    %109 = vector.broadcast %cst_40 : f32 to vector<48x1xf32>
    %110 = arith.divf %108, %109 : vector<48x1xf32>
    %111 = vector.broadcast %110 : vector<48x1xf32> to vector<48x32xf32>
    %112 = arith.subf %104, %111 : vector<48x32xf32>
    %113 = arith.mulf %112, %112 : vector<48x32xf32>
    %cst_41 = arith.constant dense<0.000000e+00> : vector<48xf32>
    %114 = vector.multi_reduction <add>, %113, %cst_41 [1] : vector<48x32xf32> to vector<48xf32>
    %115 = vector.shape_cast %114 : vector<48xf32> to vector<48x1xf32>
    %cst_42 = arith.constant 3.200000e+01 : f32
    %116 = vector.broadcast %cst_42 : f32 to vector<48x1xf32>
    %117 = arith.divf %115, %116 : vector<48x1xf32>
    %cst_43 = arith.constant 9.99999974E-6 : f32
    %118 = vector.broadcast %cst_43 : f32 to vector<48x1xf32>
    %119 = arith.addf %117, %118 : vector<48x1xf32>
    %120 = math.rsqrt %119 : vector<48x1xf32>
    %121 = vector.broadcast %120 : vector<48x1xf32> to vector<48x32xf32>
    %122 = arith.mulf %112, %121 : vector<48x32xf32>
    %123 = vector.broadcast %105 : vector<1x32xf32> to vector<48x32xf32>
    %124 = arith.mulf %122, %123 : vector<48x32xf32>
    %125 = vector.broadcast %106 : vector<1x32xf32> to vector<48x32xf32>
    %126 = arith.addf %124, %125 : vector<48x32xf32>
    %127 = arith.truncf %126 : vector<48x32xf32> to vector<48x32xbf16>
    %c0_44 = arith.constant 0 : index
    %c0_45 = arith.constant 0 : index
    %128 = vector.load %arg8[%c0_44, %c0_45] : memref<32x64xbf16, #tpu.memory_space<vmem>>, vector<32x64xbf16>
    %cst_46 = arith.constant dense<0.000000e+00> : vector<48x64xf32>
    %129 = tpu.matmul %127, %128, %cst_46 {dimension_numbers = #tpu.dot_dimension_numbers<[1], [0], [0], [1], [0, 0, 1, 1], [], []>} : vector<48x32xbf16>, vector<32x64xbf16>, vector<48x64xf32> -> vector<48x64xf32>
    %c0_47 = arith.constant 0 : index
    %c0_48 = arith.constant 0 : index
    %130 = vector.load %arg9[%c0_47, %c0_48] : memref<1x64xf32, #tpu.memory_space<vmem>>, vector<1x64xf32>
    %131 = vector.broadcast %130 : vector<1x64xf32> to vector<48x64xf32>
    %132 = arith.addf %129, %131 : vector<48x64xf32>
    %133 = arith.mulf %132, %132 : vector<48x64xf32>
    %134 = arith.mulf %132, %133 : vector<48x64xf32>
    %cst_49 = arith.constant 4.471500e-02 : f32
    %135 = vector.broadcast %cst_49 : f32 to vector<48x64xf32>
    %136 = arith.mulf %135, %134 : vector<48x64xf32>
    %137 = arith.addf %132, %136 : vector<48x64xf32>
    %cst_50 = arith.constant 0.797884583 : f32
    %138 = vector.broadcast %cst_50 : f32 to vector<48x64xf32>
    %139 = arith.mulf %138, %137 : vector<48x64xf32>
    %140 = math.tanh %139 : vector<48x64xf32>
    %cst_51 = arith.constant 1.000000e+00 : f32
    %141 = vector.broadcast %cst_51 : f32 to vector<48x64xf32>
    %142 = arith.addf %141, %140 : vector<48x64xf32>
    %cst_52 = arith.constant 5.000000e-01 : f32
    %143 = vector.broadcast %cst_52 : f32 to vector<48x64xf32>
    %144 = arith.mulf %143, %142 : vector<48x64xf32>
    %145 = arith.mulf %132, %144 : vector<48x64xf32>
    %146 = arith.truncf %145 : vector<48x64xf32> to vector<48x64xbf16>
    %c0_53 = arith.constant 0 : index
    %c0_54 = arith.constant 0 : index
    %147 = vector.load %arg10[%c0_53, %c0_54] : memref<64x32xbf16, #tpu.memory_space<vmem>>, vector<64x32xbf16>
    %cst_55 = arith.constant dense<0.000000e+00> : vector<48x32xf32>
    %148 = tpu.matmul %146, %147, %cst_55 {dimension_numbers = #tpu.dot_dimension_numbers<[1], [0], [0], [1], [0, 0, 1, 1], [], []>} : vector<48x64xbf16>, vector<64x32xbf16>, vector<48x32xf32> -> vector<48x32xf32>
    %c0_56 = arith.constant 0 : index
    %c0_57 = arith.constant 0 : index
    %149 = vector.load %arg11[%c0_56, %c0_57] : memref<1x32xf32, #tpu.memory_space<vmem>>, vector<1x32xf32>
    %150 = vector.broadcast %149 : vector<1x32xf32> to vector<48x32xf32>
    %151 = arith.addf %148, %150 : vector<48x32xf32>
    %152 = arith.addf %126, %151 : vector<48x32xf32>
    %c0_58 = arith.constant 0 : index
    %c0_59 = arith.constant 0 : index
    %153 = vector.load %arg12[%c0_58, %c0_59] : memref<1x32xf32, #tpu.memory_space<vmem>>, vector<1x32xf32>
    %c0_60 = arith.constant 0 : index
    %c0_61 = arith.constant 0 : index
    %154 = vector.load %arg13[%c0_60, %c0_61] : memref<1x32xf32, #tpu.memory_space<vmem>>, vector<1x32xf32>
    %cst_62 = arith.constant dense<0.000000e+00> : vector<48xf32>
    %155 = vector.multi_reduction <add>, %152, %cst_62 [1] : vector<48x32xf32> to vector<48xf32>
    %156 = vector.shape_cast %155 : vector<48xf32> to vector<48x1xf32>
    %cst_63 = arith.constant 3.200000e+01 : f32
    %157 = vector.broadcast %cst_63 : f32 to vector<48x1xf32>
    %158 = arith.divf %156, %157 : vector<48x1xf32>
    %159 = vector.broadcast %158 : vector<48x1xf32> to vector<48x32xf32>
    %160 = arith.subf %152, %159 : vector<48x32xf32>
    %161 = arith.mulf %160, %160 : vector<48x32xf32>
    %cst_64 = arith.constant dense<0.000000e+00> : vector<48xf32>
    %162 = vector.multi_reduction <add>, %161, %cst_64 [1] : vector<48x32xf32> to vector<48xf32>
    %163 = vector.shape_cast %162 : vector<48xf32> to vector<48x1xf32>
    %cst_65 = arith.constant 3.200000e+01 : f32
    %164 = vector.broadcast %cst_65 : f32 to vector<48x1xf32>
    %165 = arith.divf %163, %164 : vector<48x1xf32>
    %cst_66 = arith.constant 9.99999974E-6 : f32
    %166 = vector.broadcast %cst_66 : f32 to vector<48x1xf32>
    %167 = arith.addf %165, %166 : vector<48x1xf32>
    %168 = math.rsqrt %167 : vector<48x1xf32>
    %169 = vector.broadcast %168 : vector<48x1xf32> to vector<48x32xf32>
    %170 = arith.mulf %160, %169 : vector<48x32xf32>
    %171 = vector.broadcast %153 : vector<1x32xf32> to vector<48x32xf32>
    %172 = arith.mulf %170, %171 : vector<48x32xf32>
    %173 = vector.broadcast %154 : vector<1x32xf32> to vector<48x32xf32>
    %174 = arith.addf %172, %173 : vector<48x32xf32>
    %175 = arith.truncf %174 : vector<48x32xf32> to vector<48x32xbf16>
    %c0_67 = arith.constant 0 : index
    %c0_68 = arith.constant 0 : index
    %176 = vector.load %arg14[%c0_67, %c0_68] : memref<48x32xbf16, #tpu.memory_space<vmem>>, vector<48x32xbf16>
    tpu.vector_store %arg14[%c0_67, %c0_68], %175 {strides = array<i32>} : memref<48x32xbf16, #tpu.memory_space<vmem>>, vector<48x32xbf16>,
    return
  }
  func.func @transform_0(%arg0: i32) -> (i32, i32) {
    %c0_i32 = arith.constant 0 : i32
    %c0_i32_0 = arith.constant 0 : i32
    return %arg0, %c0_i32 : i32, i32
  }
  func.func @transform_1(%arg0: i32) -> (i32, i32) {
    %c0_i32 = arith.constant 0 : i32
    %c0_i32_0 = arith.constant 0 : i32
    %c0_i32_1 = arith.constant 0 : i32
    return %c0_i32, %c0_i32_0 : i32, i32
  }
  func.func @transform_2(%arg0: i32) -> (i32, i32) {
    %c0_i32 = arith.constant 0 : i32
    %c0_i32_0 = arith.constant 0 : i32
    %c0_i32_1 = arith.constant 0 : i32
    return %c0_i32, %c0_i32_0 : i32, i32
  }
  func.func @transform_3(%arg0: i32) -> (i32, i32) {
    %c0_i32 = arith.constant 0 : i32
    %c0_i32_0 = arith.constant 0 : i32
    %c0_i32_1 = arith.constant 0 : i32
    return %c0_i32, %c0_i32_0 : i32, i32
  }
  func.func @transform_4(%arg0: i32) -> (i32, i32) {
    %c0_i32 = arith.constant 0 : i32
    %c0_i32_0 = arith.constant 0 : i32
    %c0_i32_1 = arith.constant 0 : i32
    return %c0_i32, %c0_i32_0 : i32, i32
  }
  func.func @transform_5(%arg0: i32) -> (i32, i32) {
    %c0_i32 = arith.constant 0 : i32
    %c0_i32_0 = arith.constant 0 : i32
    %c0_i32_1 = arith.constant 0 : i32
    return %c0_i32, %c0_i32_0 : i32, i32
  }
  func.func @transform_6(%arg0: i32) -> (i32, i32) {
    %c0_i32 = arith.constant 0 : i32
    %c0_i32_0 = arith.constant 0 : i32
    %c0_i32_1 = arith.constant 0 : i32
    return %c0_i32, %c0_i32_0 : i32, i32
  }
  func.func @transform_7(%arg0: i32) -> (i32, i32) {
    %c0_i32 = arith.constant 0 : i32
    %c0_i32_0 = arith.constant 0 : i32
    %c0_i32_1 = arith.constant 0 : i32
    return %c0_i32, %c0_i32_0 : i32, i32
  }
  func.func @transform_8(%arg0: i32) -> (i32, i32) {
    %c0_i32 = arith.constant 0 : i32
    %c0_i32_0 = arith.constant 0 : i32
    %c0_i32_1 = arith.constant 0 : i32
    return %c0_i32, %c0_i32_0 : i32, i32
  }
  func.func @transform_9(%arg0: i32) -> (i32, i32) {
    %c0_i32 = arith.constant 0 : i32
    %c0_i32_0 = arith.constant 0 : i32
    %c0_i32_1 = arith.constant 0 : i32
    return %c0_i32, %c0_i32_0 : i32, i32
  }
  func.func @transform_10(%arg0: i32) -> (i32, i32) {
    %c0_i32 = arith.constant 0 : i32
    %c0_i32_0 = arith.constant 0 : i32
    %c0_i32_1 = arith.constant 0 : i32
    return %c0_i32, %c0_i32_0 : i32, i32
  }
  func.func @transform_11(%arg0: i32) -> (i32, i32) {
    %c0_i32 = arith.constant 0 : i32
    %c0_i32_0 = arith.constant 0 : i32
    %c0_i32_1 = arith.constant 0 : i32
    return %c0_i32, %c0_i32_0 : i32, i32
  }
  func.func @transform_12(%arg0: i32) -> (i32, i32) {
    %c0_i32 = arith.constant 0 : i32
    %c0_i32_0 = arith.constant 0 : i32
    %c0_i32_1 = arith.constant 0 : i32
    return %c0_i32, %c0_i32_0 : i32, i32
  }
  func.func @transform_13(%arg0: i32) -> (i32, i32) {
    %c0_i32 = arith.constant 0 : i32
    %c0_i32_0 = arith.constant 0 : i32
    return %arg0, %c0_i32 : i32, i32
  }
}

</mosaic_0001>

<bundles_post_ra>
// kernel: mask_transformer_forward.2
= control target key start
LH: loop header
LB: loop body
LE: loop exit
PB: predicated region body
PF: predicated region fallthrough
CT: control target
= control target key end

     0   :  { %s6108_s25 = smov 0   ;;  %s6826_s0 = inlined_call_operand.vmem [shape: bf16[96,32], index: 0, kind: input, shape index: {}, may-alias: {0,13}]   ;;  %s6827_s1 = inlined_call_operand.vmem [shape: bf16[32,96], index: 1, kind: input, shape index: {}]   ;;  %s6828_s2 = inlined_call_operand.vmem [shape: f32[1,96], index: 2, kind: input, shape index: {}]   ;;  %s6829_s3 = inlined_call_operand.vmem [shape: bf16[32,32], index: 3, kind: input, shape index: {}]   ;;  %s6830_s4 = inlined_call_operand.vmem [shape: f32[1,32], index: 4, kind: input, shape index: {}]   ;;  %s6831_s5 = inlined_call_operand.vmem [shape: f32[1,32], index: 5, kind: input, shape index: {}]   ;;  %s6832_s6 = inlined_call_operand.vmem [shape: f32[1,32], index: 6, kind: input, shape index: {}]   ;;  %s6833_s7 = inlined_call_operand.vmem [shape: bf16[32,64], index: 7, kind: input, shape index: {}]   ;;  %s6834_s8 = inlined_call_operand.vmem [shape: f32[1,64], index: 8, kind: input, shape index: {}]   ;;  %s6835_s9 = inlined_call_operand.vmem [shape: bf16[64,32], index: 9, kind: input, shape index: {}]   ;;  %s6836_s10 = inlined_call_operand.vmem [shape: f32[1,32], index: 10, kind: input, shape index: {}]   ;;  %s6837_s11 = inlined_call_operand.vmem [shape: f32[1,32], index: 11, kind: input, shape index: {}]   ;;  %s6838_s12 = inlined_call_operand.vmem [shape: f32[1,32], index: 12, kind: input, shape index: {}]   ;;  %s6839_s13 = inlined_call_operand.vmem [shape: bf16[96,32], index: 13, kind: output, shape index: {}, may-alias: {0,13}]  }
   0x1 LB: > { %s5281_s26 = sadd.s32 4294967295, %s6019_s25   ;;  %p5285_p0 = scmp.ge.s32.totalorder %s6019_s25, 1  ;;  %s6019_s25 = sphi %s6108_s25, %s23_s25  }
   0x2   : > { %p388_p1 = scmp.lt.s32.totalorder %s6019_s25, 3 }
   0x4   : > { %p389_p2 = pnand %p5285_p0, %p388_p1 }
   0x5   : > { %v5862_v0 = vld [vmem:[%s6827_s1] sm:$0xff] (!%p389_p2)   ;;  %v6021_v1 = vmov (!%p389_p2), 0.0   ;;  %v5863_v2 = vld [vmem:[%s6827_s1 + $0x8] sm:$0xff] (!%p389_p2)   ;;  %vm6022_vm0 = vmmov (!%p389_p2), 0   ;;  %s432_s14 = smul.u32 (!%p389_p2), 6, %s5281_s26  ;;  %vm495_vm1 = vcmask (!%p389_p2), 261120   ;;  %v562_v31 = vlaneseq (!%p389_p2) }
   0x6   : > { %392 = sbr.rel (%p389_p2) target bundleno = 4275 (0x10b3), region = 72  ;;  %5525 = vmatprep.subr.bf16.mxu0 (!%p389_p2), %v6021_v1  ;;  %5541 = vmatprep.subr.mxu1 (!%p389_p2), %v6021_v1  ;;  %v5288_v6 = vld [vmem:[%s6828_s2] ss:$0 sm:$0xff] (!%p389_p2)  ;;  %s6023_s21 = smov (!%p389_p2), 96   ;;  %vm569_vm2 = vcmask (!%p389_p2), 64512   ;;  %vm2571_vm4 = vcmask (!%p389_p2), 130112  }
   0x7   : > { %5526 = vmatpush3.bf16.msra.mxu0 (!%p389_p2), %v5862_v0  ;;  %5529 = vmatprep.mubr.msk.bf16.mxu0 (!%p389_p2), %vm6022_vm0, %v6021_v1  ;;  %p433_p3 = scmp.lt.s32.totalorder (!%p389_p2), %s432_s14, 11  ;;  %v563_v32 = vand.u32 (!%p389_p2), 127, %v562_v31  ;;  %v6024_v33 = vmov (!%p389_p2), -1e+30   ;;  %s6025_s22 = smov (!%p389_p2), 64   ;;  %vm3592_vm5 = vcmask (!%p389_p2), 195712  }
   0x8   : > { %5527 = vmatprep.subr.bf16.mxu0 (!%p389_p2), %v6021_v1  ;;  %5543 = vmatprep.mubr.msk.f32.mxu1 (!%p389_p2), %vm6022_vm0, %v6021_v1  ;;  %s6026_s23 = smov (!%p389_p2), 88   ;;  %s6027_s24 = smov (!%p389_p2), 120   ;;  %vm4613_vm6 = vcmask (!%p389_p2), 261312   ;;  %vm5017_vm7 = vcmask (!%p389_p2), 523264   ;;  %vm5218_vm8 = vcmask (!%p389_p2), 257024  }
   0x9   : > { %vm564_vm3 = vcmp.lt.s32.totalorder (!%p389_p2), %v563_v32, 2  ;;  %s6028_s26 = smov (!%p389_p2), 56   ;;  %s6029_s27 = smov (!%p389_p2), 80  }
   0xa   : > { %v6209_v34 = vsel (!%p389_p2), %vm564_vm3, 0.0, %v6024_v33  ;;  %s6030_s28 = smov (!%p389_p2), 112   ;;  %s6031_s29 = smov (!%p389_p2), 48  }
   0xb   : > { %5528 = vmatpush3.bf16.msra.mxu0 (!%p389_p2), %v5863_v2  ;;  %s6032_s30 = smov (!%p389_p2), 72   ;;  %s6033_s16 = smov (!%p389_p2), 104  }
   0xc   : > { %5576 = vmatprep.subr.mxu0 (!%p389_p2), %v6021_v1  ;;  %s6034_s17 = smov (!%p389_p2), 40   ;;  %s6035_s19 = smov (!%p389_p2), 8  }
   0xd   : > { %s6841_s14 = smov (!%p433_p3, %s432_s14), 11  ;;  %s6036_s20 = smov 16  }
   0xe   : > { %s5286_s15 = sshll.u32 %s6841_s14, 2 }
   0xf   : > { %s6138_s18 = scalar_lea.vmem %s6826_s0, %s5286_s15 }
  0x10   : > { %v445_v3 = vld [vmem:[%s6138_s18] sm:$0xff]   ;;  %v447_v4 = vld [vmem:[%s6138_s18 + $0x8] sm:$0xff]   ;;  %v449_v5 = vld [vmem:[%s6138_s18 + $0x10] sm:$0xff]  }
  0x11   : > { %5530 = vmatmul.mubr.msk.bf16.vlgmr.msra.gmra.mrb[0].mxu0 %vm495_vm1, %v445_v3 }
  0x12   : > { %5533 = vmatprep.mubr.msk.bf16.mxu0 %vm6022_vm0, %v6021_v1 }
  0x19   : > { %5534 = vmatmul.mubr.msk.bf16.gmra.mrb[4].mxu0 %vm495_vm1, %v447_v4 }
  0x1a   : > { %5537 = vmatprep.mubr.msk.bf16.mxu0 %vm6022_vm0, %v6021_v1 }
  0x21   : > { %5538 = vmatmul.mubr.msk.bf16.gmra.mrb[8].mxu0 %vm495_vm1, %v449_v5 }
  0x22   : > { %5578 = vmatprep.mubr.msk.f32.mxu0 %vm6022_vm0, %v6021_v1 }
  0xe4   : > { %v539_v7 = vpop.f32.mrb[0].mxu0 }
  0xe5   : > { %v6155_v8 = vadd.f32 %v5288_v6, %v539_v7  ;;  %v5531_v9 = vpop.f32.mrb[1].mxu0 }
  0xe6   : > { %v542_v10 = vpop.f32.mrb[2].mxu0 }
  0xe7   : > { %567 = vrot.lane.b32.xlu0 %v6155_v8, %s6023_s21  ;;  %v5532_v11 = vpop.f32.mrb[3].mxu0  ;;  %v6158_v12 = vadd.f32 %v5288_v6, %v542_v10 }
  0xeb   : > { %645 = vrot.lane.b32.xlu0 %v6158_v12, %s6023_s21 }
  0xec   : > { %v547_v13 = vpop.f32.mrb[4].mxu0 }
  0xed   : > { %v6161_v14 = vadd.f32 %v5288_v6, %v547_v13  ;;  %v5535_v15 = vpop.f32.mrb[5].mxu0 }
  0xee   : > { %v550_v16 = vpop.f32.mrb[6].mxu0 }
  0xef   : > { %722 = vrot.lane.b32.xlu1 %v6161_v14, %s6023_s21  ;;  %v5536_v17 = vpop.f32.mrb[7].mxu0  ;;  %v6164_v18 = vadd.f32 %v5288_v6, %v550_v16 }
  0xf3   : > { %799 = vrot.lane.b32.xlu1 %v6164_v18, %s6023_s21 }
  0xf4   : > { %v555_v19 = vpop.f32.mrb[8].mxu0 }
  0xf5   : > { %v6167_v20 = vadd.f32 %v5288_v6, %v555_v19  ;;  %v5539_v21 = vpop.f32.mrb[9].mxu0 }
  0xf6   : > { %v558_v22 = vpop.f32.mrb[10].mxu0 }
  0xf7   : > { %v6169_v23 = vadd.f32 %v5288_v6, %v558_v22  ;;  %876 = vrot.lane.b32.xlu0 %v6167_v20, %s6023_s21  ;;  %v5540_v24 = vpop.f32.mrb[11].mxu0 }
  0xf9   : > { %953 = vrot.lane.b32.xlu1 %v6169_v23, %s6023_s21 }
 0x159   : > { %v568_v25 = vpop.permute.xlu0 %567 }
 0x15a   : > { %5542 = vmatpush3.xpose.msk.msra.mxu1 %vm569_vm2, %v568_v25 }
 0x15b   : > { %5546 = vmatprep.subr.mxu1 %v6021_v1 }
 0x15d   : > { %5544 = vmatmul.mubr.msk.f32.vlgmr.msra.gmra.mrb[0].mxu1 %vm569_vm2, %v6155_v8  ;;  %v646_v26 = vpop.permute.xlu0 %645 }
 0x15e   : > { %5547 = vmatpush3.xpose.msk.msra.mxu1 %vm569_vm2, %v646_v26  ;;  %5548 = vmatprep.mubr.msk.f32.mxu1 %vm6022_vm0, %v6021_v1 }
 0x15f   : > { %5551 = vmatprep.subr.mxu1 %v6021_v1 }
 0x161   : > { %5549 = vmatmul.mubr.msk.f32.vlgmr.msra.gmra.mrb[2].mxu1 %vm569_vm2, %v6158_v12  ;;  %v723_v27 = vpop.permute.xlu1 %722 }
 0x162   : > { %5552 = vmatpush3.xpose.msk.msra.mxu1 %vm569_vm2, %v723_v27  ;;  %5553 = vmatprep.mubr.msk.f32.mxu1 %vm6022_vm0, %v6021_v1 }
 0x163   : > { %5556 = vmatprep.subr.mxu1 %v6021_v1 }
 0x165   : > { %5554 = vmatmul.mubr.msk.f32.vlgmr.msra.gmra.mrb[4].mxu1 %vm569_vm2, %v6161_v14  ;;  %v800_v28 = vpop.permute.xlu1 %799 }
 0x166   : > { %5557 = vmatpush3.xpose.msk.msra.mxu1 %vm569_vm2, %v800_v28  ;;  %5558 = vmatprep.mubr.msk.f32.mxu1 %vm6022_vm0, %v6021_v1 }
 0x167   : > { %5561 = vmatprep.subr.mxu1 %v6021_v1 }
 0x169   : > { %5559 = vmatmul.mubr.msk.f32.vlgmr.msra.gmra.mrb[6].mxu1 %vm569_vm2, %v6164_v18  ;;  %v877_v29 = vpop.permute.xlu0 %876 }
 0x16a   : > { %5562 = vmatpush3.xpose.msk.msra.mxu1 %vm569_vm2, %v877_v29  ;;  %5563 = vmatprep.mubr.msk.f32.mxu1 %vm6022_vm0, %v6021_v1 }
 0x16b   : > { %5566 = vmatprep.subr.mxu1 %v6021_v1  ;;  %v954_v30 = vpop.permute.xlu1 %953 }
 0x16d   : > { %5564 = vmatmul.mubr.msk.f32.vlgmr.msra.gmra.mrb[8].mxu1 %vm569_vm2, %v6167_v20 }
 0x16e   : > { %5567 = vmatpush3.xpose.msk.msra.mxu1 %vm569_vm2, %v954_v30  ;;  %5568 = vmatprep.mubr.msk.f32.mxu1 %vm6022_vm0, %v6021_v1 }
 0x16f   : > { %5571 = vmatprep.subr.mxu1 %v6021_v1 }
 0x171   : > { %5569 = vmatmul.mubr.msk.f32.vlgmr.msra.gmra.mrb[10].mxu1 %vm569_vm2, %v6169_v23 }
 0x172   : > { %5573 = vmatprep.mubr.msk.f32.mxu1 %vm6022_vm0, %v6021_v1 }
 0x230   : > { %v640_v35 = vpop.f32.mrb[0].mxu1 }
 0x231   : > { %v641_v36 = vadd.f32 %v640_v35, %v6209_v34  ;;  %v5545_v37 = vpop.f32.mrb[1].mxu1 }
 0x233   : > { %v1029_v38 = vsel %vm569_vm2, %v641_v36, -inf }
 0x234   : > { %v717_v39 = vpop.f32.mrb[2].mxu1  ;;  %1030 = vmax.xlane.f32.xlu0 %v1029_v38 }
 0x235   : > { %v718_v40 = vadd.f32 %v717_v39, %v6209_v34  ;;  %v5550_v41 = vpop.f32.mrb[3].mxu1 }
 0x237   : > { %v1032_v42 = vsel %vm569_vm2, %v718_v40, -inf }
 0x238   : > { %v794_v43 = vpop.f32.mrb[4].mxu1  ;;  %1033 = vmax.xlane.f32.xlu1 %v1032_v42 }
 0x239   : > { %v795_v44 = vadd.f32 %v794_v43, %v6209_v34  ;;  %v5555_v45 = vpop.f32.mrb[5].mxu1 }
 0x23b   : > { %v1035_v46 = vsel %vm569_vm2, %v795_v44, -inf }
 0x23c   : > { %v871_v47 = vpop.f32.mrb[6].mxu1  ;;  %1036 = vmax.xlane.f32.xlu0 %v1035_v46 }
 0x23d   : > { %v872_v48 = vadd.f32 %v871_v47, %v6209_v34  ;;  %v5560_v49 = vpop.f32.mrb[7].mxu1 }
 0x23f   : > { %v1038_v50 = vsel %vm569_vm2, %v872_v48, -inf }
 0x240   : > { %1039 = vmax.xlane.f32.xlu0 %v1038_v50  ;;  %v948_v51 = vpop.f32.mrb[8].mxu1 }
 0x241   : > { %v949_v52 = vadd.f32 %v948_v51, %v6209_v34  ;;  %v5565_v53 = vpop.f32.mrb[9].mxu1 }
 0x243   : > { %v1041_v54 = vsel %vm569_vm2, %v949_v52, -inf }
 0x244   : > { %1042 = vmax.xlane.f32.xlu1 %v1041_v54  ;;  %v1025_v55 = vpop.f32.mrb[10].mxu1 }
 0x245   : > { %v1026_v56 = vadd.f32 %v1025_v55, %v6209_v34  ;;  %v5570_v57 = vpop.f32.mrb[11].mxu1 }
 0x247   : > { %v1044_v58 = vsel %vm569_vm2, %v1026_v56, -inf }
 0x248   : > { %1045 = vmax.xlane.f32.xlu0 %v1044_v58 }
 0x255   : > { %1095 = vrot.lane.b32.xlu1 %v6155_v8, %s6025_s22 }
 0x259   : > { %1247 = vrot.lane.b32.xlu1 %v6161_v14, %s6025_s22 }
 0x25d   : > { %1323 = vrot.lane.b32.xlu1 %v6164_v18, %s6025_s22 }
 0x25e   : > { %1171 = vrot.lane.b32.xlu0 %v6158_v12, %s6025_s22 }
 0x261   : > { %1475 = vrot.lane.b32.xlu1 %v6169_v23, %s6025_s22 }
 0x262   : > { %1399 = vrot.lane.b32.xlu0 %v6167_v20, %s6025_s22 }
 0x265   : > { %1637 = vrot.lane.b32.xlu1 %v6158_v12, %s6026_s23 }
 0x266   : > { %1559 = vrot.lane.b32.xlu0 %v6155_v8, %s6026_s23 }
 0x269   : > { %1635 = vrot.lane.b32.xlu1 %v6158_v12, %s6027_s24 }
 0x26a   : > { %1557 = vrot.lane.b32.xlu0 %v6155_v8, %s6027_s24 }
 0x2c1   : > { %v1031_v59 = vpop.xlane.xlu0 %1030 }
 0x2c2   : > { %v1047_v60 = vsub.f32 %v641_v36, %v1031_v59 }
 0x2c4   : > { %v1053_v61 = vmul.f32 1.442695, %v1047_v60 }
 0x2c5   : > { %v1034_v62 = vpop.xlane.xlu1 %1033 }
 0x2c6   : > { %5878 = vpow2.f32 %v1053_v61  ;;  %v1048_v63 = vsub.f32 %v718_v40, %v1034_v62 }
 0x2c8   : > { %v1055_v0 = vmul.f32 1.442695, %v1048_v63 }
 0x2c9   : > { %v1037_v2 = vpop.xlane.xlu0 %1036 }
 0x2ca   : > { %5880 = vpow2.f32 %v1055_v0  ;;  %v1049_v3 = vsub.f32 %v795_v44, %v1037_v2 }
 0x2cc   : > { %v1057_v4 = vmul.f32 1.442695, %v1049_v3 }
 0x2cd   : > { %v1040_v5 = vpop.xlane.xlu0 %1039 }
 0x2ce   : > { %5882 = vpow2.f32 %v1057_v4  ;;  %v1050_v6 = vsub.f32 %v872_v48, %v1040_v5 }
 0x2d0   : > { %v5879_v7 = vpop.eup %5878  ;;  %v1059_v9 = vmul.f32 1.442695, %v1050_v6 }
 0x2d1   : > { %v1043_v10 = vpop.xlane.xlu1 %1042  ;;  %v1065_v11 = vsel %vm569_vm2, %v5879_v7, 0.0 }
 0x2d2   : > { %5884 = vpow2.f32 %v1059_v9  ;;  %v1051_v13 = vsub.f32 %v949_v52, %v1043_v10  ;;  %1066 = vadd.xlane.f32.xlu1 %v1065_v11 }
 0x2d4   : > { %v5881_v15 = vpop.eup %5880  ;;  %v1061_v16 = vmul.f32 1.442695, %v1051_v13 }
 0x2d5   : > { %v1046_v17 = vpop.xlane.xlu0 %1045  ;;  %v1096_v19 = vpop.permute.xlu1 %1095  ;;  %v1068_v21 = vsel %vm569_vm2, %v5881_v15, 0.0 }
 0x2d6   : > { %5886 = vpow2.f32 %v1061_v16  ;;  %v1052_v22 = vsub.f32 %v1026_v56, %v1046_v17  ;;  %1069 = vadd.xlane.f32.xlu0 %v1068_v21  ;;  %5572 = vmatpush3.msra.mxu1 %v1096_v19 }
 0x2d7   : > { %5581 = vmatprep.subr.mxu1 %v6021_v1 }
 0x2d8   : > { %v5883_v24 = vpop.eup %5882  ;;  %v1063_v25 = vmul.f32 1.442695, %v1052_v22 }
 0x2d9   : > { %v1172_v26 = vpop.permute.xlu0 %1171  ;;  %v1071_v27 = vsel %vm569_vm2, %v5883_v24, 0.0  ;;  %v1248_v35 = vpop.permute.xlu1 %1247 }
 0x2da   : > { %5888 = vpow2.f32 %v1063_v25  ;;  %1072 = vadd.xlane.f32.xlu1 %v1071_v27  ;;  %5577 = vmatpush3.msra.mxu0 %v1172_v26 }
 0x2db   : > { %5586 = vmatprep.subr.mxu0 %v6021_v1 }
 0x2dc   : > { %v5885_v28 = vpop.eup %5884 }
 0x2dd   : > { %v1074_v29 = vsel %vm569_vm2, %v5885_v28, 0.0  ;;  %v1324_v36 = vpop.permute.xlu1 %1323  ;;  %v1400_v38 = vpop.permute.xlu0 %1399 }
 0x2de   : > { %1075 = vadd.xlane.f32.xlu0 %v1074_v29 }
 0x2e0   : > { %v5887_v30 = vpop.eup %5886 }
 0x2e1   : > { %v1077_v31 = vsel %vm569_vm2, %v5887_v30, 0.0  ;;  %v1476_v37 = vpop.permute.xlu1 %1475  ;;  %v1560_v40 = vpop.permute.xlu0 %1559 }
 0x2e2   : > { %1078 = vadd.xlane.f32.xlu1 %v1077_v31 }
 0x2e4   : > { %v6244_v32 = vpop.eup %5888 }
 0x2e5   : > { %v1080_v33 = vsel %vm569_vm2, %v6244_v32, 0.0  ;;  %v1638_v39 = vpop.permute.xlu1 %1637  ;;  %v1558_v42 = vpop.permute.xlu0 %1557 }
 0x2e6   : > { %1081 = vadd.xlane.f32.xlu0 %v1080_v33 }
 0x2e9   : > { %v1636_v41 = vpop.permute.xlu1 %1635 }
 0x2f3   : > { %1793 = vrot.lane.b32.xlu1 %v6164_v18, %s6026_s23 }
 0x2f7   : > { %1791 = vrot.lane.b32.xlu1 %v6164_v18, %s6027_s24 }
 0x2fb   : > { %1949 = vrot.lane.b32.xlu1 %v6169_v23, %s6026_s23 }
 0x2fc   : > { %1715 = vrot.lane.b32.xlu0 %v6161_v14, %s6026_s23 }
 0x2ff   : > { %1947 = vrot.lane.b32.xlu1 %v6169_v23, %s6027_s24 }
 0x300   : > { %1713 = vrot.lane.b32.xlu0 %v6161_v14, %s6027_s24 }
 0x304   : > { %1871 = vrot.lane.b32.xlu0 %v6167_v20, %s6026_s23 }
 0x308   : > { %1869 = vrot.lane.b32.xlu0 %v6167_v20, %s6027_s24 }
 0x35f   : > { %v1067_v43 = vpop.xlane.xlu1 %1066 }
 0x360   : > { %5890 = vrcp.f32 %v1067_v43 }
 0x363   : > { %v1070_v44 = vpop.xlane.xlu0 %1069 }
 0x364   : > { %5892 = vrcp.f32 %v1070_v44 }
 0x367   : > { %v1073_v45 = vpop.xlane.xlu1 %1072 }
 0x368   : > { %5894 = vrcp.f32 %v1073_v45 }
 0x36a   : > { %v5891_v46 = vpop.eup %5890 }
 0x36b   : > { %v1076_v47 = vpop.xlane.xlu0 %1075  ;;  %v1084_v48 = vmul.f32 %v5891_v46, %v5879_v7 }
 0x36c   : > { %5896 = vrcp.f32 %v1076_v47 }
 0x36d   : > { %5574 = vmatmul.mubr.msk.f32.vlgmr.msra.gmra.mrb[12].mxu1 %vm569_vm2, %v1084_v48 }
 0x36e   : > { %v5893_v49 = vpop.eup %5892  ;;  %5582 = vmatpush3.msra.mxu1 %v1248_v35  ;;  %5583 = vmatprep.mubr.msk.f32.mxu1 %vm6022_vm0, %v6021_v1 }
 0x36f   : > { %v1086_v50 = vmul.f32 %v5893_v49, %v5881_v15  ;;  %v1079_v51 = vpop.xlane.xlu1 %1078  ;;  %5591 = vmatprep.subr.mxu1 %v6021_v1 }
 0x370   : > { %5898 = vrcp.f32 %v1079_v51 }
 0x371   : > { %5579 = vmatmul.mubr.msk.f32.vlgmr.msra.gmra.mrb[12].mxu0 %vm569_vm2, %v1086_v50 }
 0x372   : > { %v5895_v52 = vpop.eup %5894  ;;  %5587 = vmatpush3.msra.mxu0 %v1324_v36  ;;  %5588 = vmatprep.mubr.msk.f32.mxu0 %vm6022_vm0, %v6021_v1 }
 0x373   : > { %v1082_v53 = vpop.xlane.xlu0 %1081  ;;  %v1088_v54 = vmul.f32 %v5895_v52, %v5883_v24  ;;  %5596 = vmatprep.subr.mxu0 %v6021_v1  ;;  %v1794_v59 = vpop.permute.xlu1 %1793 }
 0x374   : > { %5900 = vrcp.f32 %v1082_v53 }
 0x375   : > { %5584 = vmatmul.mubr.msk.f32.vlgmr.msra.gmra.mrb[14].mxu1 %vm569_vm2, %v1088_v54 }
 0x376   : > { %v5897_v55 = vpop.eup %5896  ;;  %5592 = vmatpush3.msra.mxu1 %v1400_v38  ;;  %5593 = vmatprep.mubr.msk.f32.mxu1 %vm6022_vm0, %v6021_v1 }
 0x377   : > { %v1716_v56 = vpop.permute.xlu0 %1715  ;;  %v1090_v57 = vmul.f32 %v5897_v55, %v5885_v28  ;;  %5601 = vmatprep.subr.mxu1 %v6021_v1  ;;  %v1792_v0 = vpop.permute.xlu1 %1791 }
 0x379   : > { %5589 = vmatmul.mubr.msk.f32.vlgmr.msra.gmra.mrb[14].mxu0 %vm569_vm2, %v1090_v57 }
 0x37a   : > { %v5899_v58 = vpop.eup %5898  ;;  %5597 = vmatpush3.msra.mxu0 %v1476_v37  ;;  %5598 = vmatprep.mubr.msk.f32.mxu0 %vm6022_vm0, %v6021_v1 }
 0x37b   : > { %v1092_v60 = vmul.f32 %v5899_v58, %v5887_v30  ;;  %5606 = vmatprep.subr.mxu0 %v6021_v1  ;;  %v1714_v61 = vpop.permute.xlu0 %1713  ;;  %v1950_v3 = vpop.permute.xlu1 %1949 }
 0x37d   : > { %5594 = vmatmul.mubr.msk.f32.vlgmr.msra.gmra.mrb[16].mxu1 %vm569_vm2, %v1092_v60 }
 0x37e   : > { %v5901_v62 = vpop.eup %5900  ;;  %5602 = vmatpush3.xpose.msk.msra.mxu1 %vm569_vm2, %v1560_v40  ;;  %5603 = vmatprep.mubr.msk.f32.mxu1 %vm6022_vm0, %v6021_v1 }
 0x37f   : > { %5611 = vmatprep.subr.mxu1 %v6021_v1  ;;  %v1094_v63 = vmul.f32 %v5901_v62, %v6244_v32  ;;  %v1872_v2 = vpop.permute.xlu0 %1871  ;;  %v1948_v5 = vpop.permute.xlu1 %1947 }
 0x381   : > { %5599 = vmatmul.mubr.msk.f32.vlgmr.msra.gmra.mrb[16].mxu0 %vm569_vm2, %v1094_v63  ;;  %5604 = vmatmul.mubr.msk.f32.vlgmr.msra.gmra.mrb[18].mxu1 %vm569_vm2, %v1558_v42 }
 0x382   : > { %5607 = vmatpush3.xpose.msk.msra.mxu0 %vm569_vm2, %v1638_v39  ;;  %5612 = vmatpush3.xpose.msk.msra.mxu1 %vm569_vm2, %v1716_v56 }
 0x383   : > { %5608 = vmatprep.mubr.msk.f32.mxu0 %vm6022_vm0, %v6021_v1  ;;  %5613 = vmatprep.mubr.msk.f32.mxu1 %vm6022_vm0, %v6021_v1  ;;  %v1870_v4 = vpop.permute.xlu0 %1869 }
 0x384   : > { %5616 = vmatprep.subr.mxu0 %v6021_v1  ;;  %5621 = vmatprep.subr.mxu1 %v6021_v1 }
 0x385   : > { %5609 = vmatmul.mubr.msk.f32.vlgmr.msra.gmra.mrb[18].mxu0 %vm569_vm2, %v1636_v41  ;;  %5614 = vmatmul.mubr.msk.f32.vlgmr.msra.gmra.mrb[20].mxu1 %vm569_vm2, %v1714_v61 }
 0x386   : > { %5617 = vmatpush3.xpose.msk.msra.mxu0 %vm569_vm2, %v1794_v59  ;;  %5622 = vmatpush3.xpose.msk.msra.mxu1 %vm569_vm2, %v1872_v2 }
 0x387   : > { %5618 = vmatprep.mubr.msk.f32.mxu0 %vm6022_vm0, %v6021_v1  ;;  %5623 = vmatprep.mubr.msk.f32.mxu1 %vm6022_vm0, %v6021_v1 }
 0x388   : > { %5626 = vmatprep.subr.mxu0 %v6021_v1  ;;  %5631 = vmatprep.subr.mxu1 %v6021_v1 }
 0x389   : > { %5619 = vmatmul.mubr.msk.f32.vlgmr.msra.gmra.mrb[20].mxu0 %vm569_vm2, %v1792_v0  ;;  %5624 = vmatmul.mubr.msk.f32.vlgmr.msra.gmra.mrb[22].mxu1 %vm569_vm2, %v1870_v4 }
 0x38a   : > { %5627 = vmatpush3.xpose.msk.msra.mxu0 %vm569_vm2, %v1950_v3  ;;  %5628 = vmatprep.mubr.msk.f32.mxu0 %vm6022_vm0, %v6021_v1 }
 0x38b   : > { %5636 = vmatprep.subr.mxu0 %v6021_v1  ;;  %5633 = vmatprep.mubr.msk.f32.mxu1 %vm6022_vm0, %v6021_v1 }
 0x38d   : > { %5629 = vmatmul.mubr.msk.f32.vlgmr.msra.gmra.mrb[22].mxu0 %vm569_vm2, %v1948_v5 }
 0x38e   : > { %5638 = vmatprep.mubr.msk.f32.mxu0 %vm6022_vm0, %v6021_v1 }
 0x440   : > { %v1167_v6 = vpop.f32.mrb[12].mxu1 }
 0x441   : > { %1551 = vst.msk [vmem:[#allocation2] sm:$0xff] %vm569_vm2, %v1167_v6  ;;  %v5575_v7 = vpop.f32.mrb[13].mxu1 }
 0x444   : > { %v1243_v9 = vpop.f32.mrb[12].mxu0 }
 0x445   : > { %1552 = vst.msk [vmem:[#allocation2 + $0x8] sm:$0xff] %vm569_vm2, %v1243_v9  ;;  %v5580_v10 = vpop.f32.mrb[13].mxu0 }
 0x448   : > { %v1319_v11 = vpop.f32.mrb[14].mxu1 }
 0x449   : > { %1553 = vst.msk [vmem:[#allocation2 + $0x10] sm:$0xff] %vm569_vm2, %v1319_v11  ;;  %v5585_v13 = vpop.f32.mrb[15].mxu1 }
 0x44c   : > { %v1395_v15 = vpop.f32.mrb[14].mxu0 }
 0x44d   : > { %1554 = vst.msk [vmem:[#allocation2 + $0x18] sm:$0xff] %vm569_vm2, %v1395_v15  ;;  %v5590_v16 = vpop.f32.mrb[15].mxu0 }
 0x450   : > { %v1471_v17 = vpop.f32.mrb[16].mxu1 }
 0x451   : > { %1555 = vst.msk [vmem:[#allocation2 + $0x20] sm:$0xff] %vm569_vm2, %v1471_v17  ;;  %v5595_v19 = vpop.f32.mrb[17].mxu1 }
 0x454   : > { %v1547_v21 = vpop.f32.mrb[16].mxu0  ;;  %v1631_v22 = vpop.f32.mrb[18].mxu1 }
 0x455   : > { %1556 = vst.msk [vmem:[#allocation2 + $0x28] sm:$0xff] %vm569_vm2, %v1547_v21  ;;  %v1632_v24 = vadd.f32 %v1631_v22, %v6209_v34  ;;  %v5600_v25 = vpop.f32.mrb[17].mxu0  ;;  %v5605_v26 = vpop.f32.mrb[19].mxu1 }
 0x457   : > { %v2025_v27 = vsel %vm569_vm2, %v1632_v24, -inf }
 0x458   : > { %2026 = vmax.xlane.f32.xlu0 %v2025_v27  ;;  %v1709_v28 = vpop.f32.mrb[18].mxu0  ;;  %v1787_v29 = vpop.f32.mrb[20].mxu1 }
 0x459   : > { %v1710_v30 = vadd.f32 %v1709_v28, %v6209_v34  ;;  %v1788_v31 = vadd.f32 %v1787_v29, %v6209_v34  ;;  %v5610_v32 = vpop.f32.mrb[19].mxu0  ;;  %v5615_v33 = vpop.f32.mrb[21].mxu1 }
 0x45b   : > { %v2031_v35 = vsel %vm569_vm2, %v1788_v31, -inf  ;;  %v2028_v36 = vsel %vm569_vm2, %v1710_v30, -inf }
 0x45c   : > { %2032 = vmax.xlane.f32.xlu0 %v2031_v35  ;;  %v1943_v37 = vpop.f32.mrb[22].mxu1  ;;  %2029 = vmax.xlane.f32.xlu1 %v2028_v36  ;;  %v1865_v38 = vpop.f32.mrb[20].mxu0 }
 0x45d   : > { %v1944_v39 = vadd.f32 %v1943_v37, %v6209_v34  ;;  %v1866_v40 = vadd.f32 %v1865_v38, %v6209_v34  ;;  %v5620_v41 = vpop.f32.mrb[21].mxu0  ;;  %v5625_v42 = vpop.f32.mrb[23].mxu1 }
 0x45f   : > { %v2037_v43 = vsel %vm569_vm2, %v1944_v39, -inf  ;;  %v2034_v44 = vsel %vm569_vm2, %v1866_v40, -inf }
 0x460   : > { %2038 = vmax.xlane.f32.xlu1 %v2037_v43  ;;  %2035 = vmax.xlane.f32.xlu0 %v2034_v44  ;;  %v2021_v45 = vpop.f32.mrb[22].mxu0 }
 0x461   : > { %v2022_v46 = vadd.f32 %v2021_v45, %v6209_v34  ;;  %v5630_v47 = vpop.f32.mrb[23].mxu0 }
 0x463   : > { %v2040_v48 = vsel %vm569_vm2, %v2022_v46, -inf }
 0x464   : > { %2041 = vmax.xlane.f32.xlu0 %v2040_v48 }
 0x471   : > { %2091 = vrot.lane.b32.xlu1 %v6155_v8, %s6028_s26 }
 0x475   : > { %2243 = vrot.lane.b32.xlu1 %v6161_v14, %s6028_s26 }
 0x479   : > { %2319 = vrot.lane.b32.xlu1 %v6164_v18, %s6028_s26 }
 0x47a   : > { %2167 = vrot.lane.b32.xlu0 %v6158_v12, %s6028_s26 }
 0x47d   : > { %2471 = vrot.lane.b32.xlu1 %v6169_v23, %s6028_s26 }
 0x47e   : > { %2395 = vrot.lane.b32.xlu0 %v6167_v20, %s6028_s26  ;;  %s6037_s26 = smov 24  }
 0x481   : > { %2658 = vrot.lane.b32.xlu1 %v6158_v12, %s6029_s27 }
 0x482   : > { %2580 = vrot.lane.b32.xlu0 %v6155_v8, %s6029_s27 }
 0x485   : > { %2656 = vrot.lane.b32.xlu1 %v6158_v12, %s6030_s28 }
 0x486   : > { %2578 = vrot.lane.b32.xlu0 %v6155_v8, %s6030_s28 }
 0x4e5   : > { %v2027_v49 = vpop.xlane.xlu0 %2026 }
 0x4e6   : > { %v2043_v50 = vsub.f32 %v1632_v24, %v2027_v49 }
 0x4e8   : > { %v2049_v51 = vmul.f32 1.442695, %v2043_v50 }
 0x4e9   : > { %v2033_v52 = vpop.xlane.xlu0 %2032  ;;  %v2030_v53 = vpop.xlane.xlu1 %2029 }
 0x4ea   : > { %5902 = vpow2.f32 %v2049_v51  ;;  %v2045_v54 = vsub.f32 %v1788_v31, %v2033_v52  ;;  %v2044_v55 = vsub.f32 %v1710_v30, %v2030_v53 }
 0x4ec   : > { %v2053_v56 = vmul.f32 1.442695, %v2045_v54  ;;  %v2051_v57 = vmul.f32 1.442695, %v2044_v55 }
 0x4ed   : > { %v2039_v58 = vpop.xlane.xlu1 %2038  ;;  %v2036_v59 = vpop.xlane.xlu0 %2035 }
 0x4ee   : > { %5904 = vpow2.f32 %v2053_v56  ;;  %v2047_v60 = vsub.f32 %v1944_v39, %v2039_v58  ;;  %v2046_v61 = vsub.f32 %v1866_v40, %v2036_v59 }
 0x4ef   : > { %5906 = vpow2.f32 %v2051_v57 }
 0x4f0   : > { %v2057_v62 = vmul.f32 1.442695, %v2047_v60  ;;  %v2055_v63 = vmul.f32 1.442695, %v2046_v61 }
 0x4f1   : > { %v2092_v0 = vpop.permute.xlu1 %2091  ;;  %v2042_v2 = vpop.xlane.xlu0 %2041 }
 0x4f2   : > { %5908 = vpow2.f32 %v2057_v62  ;;  %v2048_v3 = vsub.f32 %v2022_v46, %v2042_v2  ;;  %5632 = vmatpush3.msra.mxu1 %v2092_v0 }
 0x4f3   : > { %5910 = vpow2.f32 %v2055_v63  ;;  %5641 = vmatprep.subr.mxu1 %v6021_v1 }
 0x4f4   : > { %v5903_v4 = vpop.eup %5902  ;;  %v2059_v5 = vmul.f32 1.442695, %v2048_v3 }
 0x4f5   : > { %v2168_v6 = vpop.permute.xlu0 %2167  ;;  %v2061_v7 = vsel %vm569_vm2, %v5903_v4, 0.0  ;;  %v2244_v24 = vpop.permute.xlu1 %2243 }
 0x4f6   : > { %5912 = vpow2.f32 %v2059_v5  ;;  %2062 = vadd.xlane.f32.xlu1 %v2061_v7  ;;  %5637 = vmatpush3.msra.mxu0 %v2168_v6 }
 0x4f7   : > { %5646 = vmatprep.subr.mxu0 %v6021_v1 }
 0x4f8   : > { %v5905_v9 = vpop.eup %5904 }
 0x4f9   : > { %v5907_v10 = vpop.eup %5906  ;;  %v2067_v11 = vsel %vm569_vm2, %v5905_v9, 0.0  ;;  %v2320_v25 = vpop.permute.xlu1 %2319 }
 0x4fa   : > { %2068 = vadd.xlane.f32.xlu1 %v2067_v11  ;;  %v2064_v13 = vsel %vm569_vm2, %v5907_v10, 0.0  ;;  %v2396_v27 = vpop.permute.xlu0 %2395 }
 0x4fb   : > { %2065 = vadd.xlane.f32.xlu0 %v2064_v13 }
 0x4fc   : > { %v5909_v15 = vpop.eup %5908 }
 0x4fd   : > { %v6354_v16 = vpop.eup %5910  ;;  %v2073_v17 = vsel %vm569_vm2, %v5909_v15, 0.0  ;;  %v2472_v26 = vpop.permute.xlu1 %2471 }
 0x4fe   : > { %2074 = vadd.xlane.f32.xlu1 %v2073_v17  ;;  %v2070_v19 = vsel %vm569_vm2, %v6354_v16, 0.0  ;;  %v2581_v29 = vpop.permute.xlu0 %2580 }
 0x4ff   : > { %2071 = vadd.xlane.f32.xlu0 %v2070_v19 }
 0x500   : > { %v6359_v21 = vpop.eup %5912 }
 0x501   : > { %v2076_v22 = vsel %vm569_vm2, %v6359_v21, 0.0  ;;  %v2659_v28 = vpop.permute.xlu1 %2658 }
 0x502   : > { %v2579_v32 = vpop.permute.xlu0 %2578 }
 0x503   : > { %2077 = vadd.xlane.f32.xlu0 %v2076_v22 }
 0x505   : > { %v2657_v30 = vpop.permute.xlu1 %2656 }
 0x50f   : > { %2814 = vrot.lane.b32.xlu1 %v6164_v18, %s6029_s27 }
 0x513   : > { %2812 = vrot.lane.b32.xlu1 %v6164_v18, %s6030_s28 }
 0x517   : > { %2970 = vrot.lane.b32.xlu1 %v6169_v23, %s6029_s27 }
 0x519   : > { %2736 = vrot.lane.b32.xlu0 %v6161_v14, %s6029_s27 }
 0x51b   : > { %2968 = vrot.lane.b32.xlu1 %v6169_v23, %s6030_s28 }
 0x51d   : > { %2734 = vrot.lane.b32.xlu0 %v6161_v14, %s6030_s28 }
 0x51f   : > { %3112 = vrot.lane.b32.xlu1 %v6155_v8, %s6031_s29 }
 0x521   : > { %2892 = vrot.lane.b32.xlu0 %v6167_v20, %s6029_s27  ;;  %s6807_s27 = scalar_lea.vmem %s6839_s13, %s5286_s15 }
 0x523   : > { %3264 = vrot.lane.b32.xlu1 %v6161_v14, %s6031_s29 }
 0x525   : > { %2890 = vrot.lane.b32.xlu0 %v6167_v20, %s6030_s28 }
 0x527   : > { %3340 = vrot.lane.b32.xlu1 %v6164_v18, %s6031_s29 }
 0x529   : > { %3188 = vrot.lane.b32.xlu0 %v6158_v12, %s6031_s29 }
 0x583   : > { %v2063_v31 = vpop.xlane.xlu1 %2062 }
 0x584   : > { %5914 = vrcp.f32 %v2063_v31 }
 0x587   : > { %v2069_v33 = vpop.xlane.xlu1 %2068 }
 0x588   : > { %5916 = vrcp.f32 %v2069_v33  ;;  %v2066_v35 = vpop.xlane.xlu0 %2065 }
 0x589   : > { %5918 = vrcp.f32 %v2066_v35 }
 0x58b   : > { %v2075_v36 = vpop.xlane.xlu1 %2074 }
 0x58c   : > { %5920 = vrcp.f32 %v2075_v36  ;;  %v2072_v37 = vpop.xlane.xlu0 %2071 }
 0x58d   : > { %5922 = vrcp.f32 %v2072_v37 }
 0x58e   : > { %v5915_v38 = vpop.eup %5914 }
 0x58f   : > { %v2080_v39 = vmul.f32 %v5915_v38, %v5903_v4  ;;  %v2815_v40 = vpop.permute.xlu1 %2814 }
 0x590   : > { %v2078_v41 = vpop.xlane.xlu0 %2077 }
 0x591   : > { %5924 = vrcp.f32 %v2078_v41  ;;  %5634 = vmatmul.mubr.msk.f32.vlgmr.msra.gmra.mrb[24].mxu1 %vm569_vm2, %v2080_v39 }
 0x592   : > { %v5917_v42 = vpop.eup %5916  ;;  %5642 = vmatpush3.msra.mxu1 %v2244_v24  ;;  %5643 = vmatprep.mubr.msk.f32.mxu1 %vm6022_vm0, %v6021_v1 }
 0x593   : > { %v5919_v43 = vpop.eup %5918  ;;  %5651 = vmatprep.subr.mxu1 %v6021_v1  ;;  %v2084_v44 = vmul.f32 %v5917_v42, %v5905_v9  ;;  %v2813_v48 = vpop.permute.xlu1 %2812 }
 0x594   : > { %v2082_v45 = vmul.f32 %v5919_v43, %v5907_v10  ;;  %v2737_v46 = vpop.permute.xlu0 %2736 }
 0x595   : > { %5644 = vmatmul.mubr.msk.f32.vlgmr.msra.gmra.mrb[26].mxu1 %vm569_vm2, %v2084_v44 }
 0x596   : > { %v5921_v47 = vpop.eup %5920  ;;  %5639 = vmatmul.mubr.msk.f32.vlgmr.msra.gmra.mrb[24].mxu0 %vm569_vm2, %v2082_v45  ;;  %5652 = vmatpush3.msra.mxu1 %v2396_v27 }
 0x597   : > { %v5923_v49 = vpop.eup %5922  ;;  %v2088_v50 = vmul.f32 %v5921_v47, %v5909_v15  ;;  %5647 = vmatpush3.msra.mxu0 %v2320_v25  ;;  %5648 = vmatprep.mubr.msk.f32.mxu0 %vm6022_vm0, %v6021_v1  ;;  %v2971_v54 = vpop.permute.xlu1 %2970 }
 0x598   : > { %5653 = vmatprep.mubr.msk.f32.mxu1 %vm6022_vm0, %v6021_v1  ;;  %5656 = vmatprep.subr.mxu0 %v6021_v1  ;;  %v2086_v51 = vmul.f32 %v5923_v49, %v6354_v16  ;;  %v2735_v53 = vpop.permute.xlu0 %2734 }
 0x599   : > { %5654 = vmatmul.mubr.msk.f32.vlgmr.msra.gmra.mrb[28].mxu1 %vm569_vm2, %v2088_v50  ;;  %5661 = vmatprep.subr.mxu1 %v6021_v1 }
 0x59a   : > { %5649 = vmatmul.mubr.msk.f32.vlgmr.msra.gmra.mrb[26].mxu0 %vm569_vm2, %v2086_v51  ;;  %5663 = vmatprep.mubr.msk.f32.mxu1 %vm6022_vm0, %v6021_v1 }
 0x59b   : > { %v5925_v52 = vpop.eup %5924  ;;  %5657 = vmatpush3.msra.mxu0 %v2472_v26  ;;  %5658 = vmatprep.mubr.msk.f32.mxu0 %vm6022_vm0, %v6021_v1  ;;  %v2969_v57 = vpop.permute.xlu1 %2968 }
 0x59c   : > { %v2090_v55 = vmul.f32 %v5925_v52, %v6359_v21  ;;  %5666 = vmatprep.subr.mxu0 %v6021_v1  ;;  %v2893_v56 = vpop.permute.xlu0 %2892 }
 0x59d   : > { %5662 = vmatpush3.xpose.msk.msra.mxu1 %vm569_vm2, %v2581_v29 }
 0x59e   : > { %5659 = vmatmul.mubr.msk.f32.vlgmr.msra.gmra.mrb[28].mxu0 %vm569_vm2, %v2090_v55  ;;  %5671 = vmatprep.subr.mxu1 %v6021_v1 }
 0x59f   : > { %5668 = vmatprep.mubr.msk.f32.mxu0 %vm6022_vm0, %v6021_v1  ;;  %v3113_v59 = vpop.permute.xlu1 %3112 }
 0x5a0   : > { %5664 = vmatmul.mubr.msk.f32.vlgmr.msra.gmra.mrb[30].mxu1 %vm569_vm2, %v2579_v32  ;;  %v2891_v58 = vpop.permute.xlu0 %2890 }
 0x5a1   : > { %5672 = vmatpush3.xpose.msk.msra.mxu1 %vm569_vm2, %v2737_v46  ;;  %5673 = vmatprep.mubr.msk.f32.mxu1 %vm6022_vm0, %v6021_v1 }
 0x5a2   : > { %5667 = vmatpush3.xpose.msk.msra.mxu0 %vm569_vm2, %v2659_v28  ;;  %5681 = vmatprep.subr.mxu1 %v6021_v1 }
 0x5a3   : > { %5676 = vmatprep.subr.mxu0 %v6021_v1  ;;  %v6471_v41 = vpop.permute.xlu1 %3264 }
 0x5a4   : > { %5674 = vmatmul.mubr.msk.f32.vlgmr.msra.gmra.mrb[32].mxu1 %vm569_vm2, %v2735_v53  ;;  %v3189_v60 = vpop.permute.xlu0 %3188 }
 0x5a5   : > { %5669 = vmatmul.mubr.msk.f32.vlgmr.msra.gmra.mrb[30].mxu0 %vm569_vm2, %v2657_v30  ;;  %5682 = vmatpush3.xpose.msk.msra.mxu1 %vm569_vm2, %v2893_v56 }
 0x5a6   : > { %5677 = vmatpush3.xpose.msk.msra.mxu0 %vm569_vm2, %v2815_v40  ;;  %5678 = vmatprep.mubr.msk.f32.mxu0 %vm6022_vm0, %v6021_v1 }
 0x5a7   : > { %5683 = vmatprep.mubr.msk.f32.mxu1 %vm6022_vm0, %v6021_v1  ;;  %5686 = vmatprep.subr.mxu0 %v6021_v1  ;;  %v6473_v43 = vpop.permute.xlu1 %3340 }
 0x5a8   : > { %5684 = vmatmul.mubr.msk.f32.vlgmr.msra.gmra.mrb[34].mxu1 %vm569_vm2, %v2891_v58  ;;  %5691 = vmatprep.subr.mxu1 %v6021_v1 }
 0x5a9   : > { %5679 = vmatmul.mubr.msk.f32.vlgmr.msra.gmra.mrb[32].mxu0 %vm569_vm2, %v2813_v48  ;;  %5692 = vmatpush3.msra.mxu1 %v3113_v59 }
 0x5aa   : > { %5687 = vmatpush3.xpose.msk.msra.mxu0 %vm569_vm2, %v2971_v54  ;;  %5688 = vmatprep.mubr.msk.f32.mxu0 %vm6022_vm0, %v6021_v1 }
 0x5ab   : > { %5696 = vmatprep.subr.mxu0 %v6021_v1  ;;  %5693 = vmatprep.mubr.msk.f32.mxu1 %vm6022_vm0, %v6021_v1 }
 0x5ac   : > { %5701 = vmatprep.subr.mxu1 %v6021_v1 }
 0x5ad   : > { %5689 = vmatmul.mubr.msk.f32.vlgmr.msra.gmra.mrb[34].mxu0 %vm569_vm2, %v2969_v57 }
 0x5ae   : > { %5697 = vmatpush3.msra.mxu0 %v3189_v60  ;;  %5698 = vmatprep.mubr.msk.f32.mxu0 %vm6022_vm0, %v6021_v1 }
 0x5af   : > { %5706 = vmatprep.subr.mxu0 %v6021_v1 }
 0x664   : > { %v6443_v61 = vpop.f32.mrb[24].mxu1 }
 0x665   : > { %v5635_v62 = vpop.f32.mrb[25].mxu1 }
 0x668   : > { %v6445_v63 = vpop.f32.mrb[26].mxu1 }
 0x669   : > { %v6447_v0 = vpop.f32.mrb[24].mxu0  ;;  %v5645_v2 = vpop.f32.mrb[27].mxu1 }
 0x66a   : > { %v5640_v3 = vpop.f32.mrb[25].mxu0 }
 0x66c   : > { %v6449_v4 = vpop.f32.mrb[28].mxu1 }
 0x66d   : > { %v6451_v5 = vpop.f32.mrb[26].mxu0  ;;  %v5655_v6 = vpop.f32.mrb[29].mxu1 }
 0x66e   : > { %v5650_v7 = vpop.f32.mrb[27].mxu0 }
 0x671   : > { %v6453_v9 = vpop.f32.mrb[28].mxu0 }
 0x672   : > { %v5660_v10 = vpop.f32.mrb[29].mxu0 }
 0x673   : > { %v2652_v11 = vpop.f32.mrb[30].mxu1 }
 0x674   : > { %v2653_v13 = vadd.f32 %v2652_v11, %v6209_v34  ;;  %v5665_v15 = vpop.f32.mrb[31].mxu1 }
 0x676   : > { %v3046_v16 = vsel %vm569_vm2, %v2653_v13, -inf }
 0x677   : > { %3047 = vmax.xlane.f32.xlu0 %v3046_v16  ;;  %v2808_v17 = vpop.f32.mrb[32].mxu1 }
 0x678   : > { %v2730_v19 = vpop.f32.mrb[30].mxu0  ;;  %v2809_v21 = vadd.f32 %v2808_v17, %v6209_v34  ;;  %v5675_v22 = vpop.f32.mrb[33].mxu1 }
 0x679   : > { %v2731_v24 = vadd.f32 %v2730_v19, %v6209_v34  ;;  %v5670_v25 = vpop.f32.mrb[31].mxu0 }
 0x67a   : > { %v3052_v26 = vsel %vm569_vm2, %v2809_v21, -inf }
 0x67b   : > { %3053 = vmax.xlane.f32.xlu0 %v3052_v26  ;;  %v2964_v27 = vpop.f32.mrb[34].mxu1  ;;  %v3049_v28 = vsel %vm569_vm2, %v2731_v24, -inf }
 0x67c   : > { %v2965_v29 = vadd.f32 %v2964_v27, %v6209_v34  ;;  %3050 = vmax.xlane.f32.xlu1 %v3049_v28  ;;  %v2886_v30 = vpop.f32.mrb[32].mxu0  ;;  %v5685_v31 = vpop.f32.mrb[35].mxu1 }
 0x67d   : > { %v2887_v32 = vadd.f32 %v2886_v30, %v6209_v34  ;;  %v5680_v33 = vpop.f32.mrb[33].mxu0 }
 0x67e   : > { %v3058_v35 = vsel %vm569_vm2, %v2965_v29, -inf }
 0x67f   : > { %v3055_v36 = vsel %vm569_vm2, %v2887_v32, -inf }
 0x680   : > { %3059 = vmax.xlane.f32.xlu1 %v3058_v35  ;;  %3056 = vmax.xlane.f32.xlu0 %v3055_v36  ;;  %v3042_v37 = vpop.f32.mrb[34].mxu0 }
 0x681   : > { %v3043_v38 = vadd.f32 %v3042_v37, %v6209_v34  ;;  %v5690_v39 = vpop.f32.mrb[35].mxu0 }
 0x683   : > { %v3061_v40 = vsel %vm569_vm2, %v3043_v38, -inf }
 0x684   : > { %3062 = vmax.xlane.f32.xlu0 %v3061_v40 }
 0x691   : > { %3492 = vrot.lane.b32.xlu1 %v6169_v23, %s6031_s29 }
 0x69a   : > { %3416 = vrot.lane.b32.xlu0 %v6167_v20, %s6031_s29 }
 0x704   : > { %v3048_v42 = vpop.xlane.xlu0 %3047 }
 0x705   : > { %v3064_v44 = vsub.f32 %v2653_v13, %v3048_v42 }
 0x707   : > { %v3070_v45 = vmul.f32 1.442695, %v3064_v44 }
 0x708   : > { %v3054_v46 = vpop.xlane.xlu0 %3053 }
 0x709   : > { %5926 = vpow2.f32 %v3070_v45  ;;  %v3066_v47 = vsub.f32 %v2809_v21, %v3054_v46  ;;  %v3051_v48 = vpop.xlane.xlu1 %3050 }
 0x70a   : > { %v3065_v49 = vsub.f32 %v2731_v24, %v3051_v48 }
 0x70b   : > { %v3074_v50 = vmul.f32 1.442695, %v3066_v47 }
 0x70c   : > { %v3072_v51 = vmul.f32 1.442695, %v3065_v49 }
 0x70d   : > { %5928 = vpow2.f32 %v3074_v50  ;;  %v3057_v52 = vpop.xlane.xlu0 %3056  ;;  %v3060_v3 = vpop.xlane.xlu1 %3059 }
 0x70e   : > { %5930 = vpow2.f32 %v3072_v51  ;;  %v3067_v53 = vsub.f32 %v2887_v32, %v3057_v52  ;;  %v3068_v6 = vsub.f32 %v2965_v29, %v3060_v3 }
 0x710   : > { %v3076_v54 = vmul.f32 1.442695, %v3067_v53  ;;  %v3078_v10 = vmul.f32 1.442695, %v3068_v6 }
 0x711   : > { %v3063_v7 = vpop.xlane.xlu0 %3062  ;;  %v3493_v21 = vpop.permute.xlu1 %3492 }
 0x712   : > { %5932 = vpow2.f32 %v3076_v54  ;;  %v3069_v11 = vsub.f32 %v3043_v38, %v3063_v7 }
 0x713   : > { %v5927_v55 = vpop.eup %5926  ;;  %5934 = vpow2.f32 %v3078_v10 }
 0x714   : > { %v3082_v56 = vsel %vm569_vm2, %v5927_v55, 0.0  ;;  %v3080_v13 = vmul.f32 1.442695, %v3069_v11 }
 0x715   : > { %3083 = vadd.xlane.f32.xlu1 %v3082_v56  ;;  %v3417_v24 = vpop.permute.xlu0 %3416 }
 0x716   : > { %5936 = vpow2.f32 %v3080_v13 }
 0x717   : > { %v5929_v57 = vpop.eup %5928 }
 0x718   : > { %v5931_v58 = vpop.eup %5930  ;;  %v3088_v59 = vsel %vm569_vm2, %v5929_v57, 0.0 }
 0x719   : > { %3089 = vadd.xlane.f32.xlu1 %v3088_v59  ;;  %v3085_v60 = vsel %vm569_vm2, %v5931_v58, 0.0 }
 0x71a   : > { %3086 = vadd.xlane.f32.xlu0 %v3085_v60 }
 0x71c   : > { %v5933_v62 = vpop.eup %5932 }
 0x71d   : > { %v3091_v2 = vsel %vm569_vm2, %v5933_v62, 0.0  ;;  %v5935_v15 = vpop.eup %5934 }
 0x71e   : > { %3092 = vadd.xlane.f32.xlu0 %v3091_v2  ;;  %v3094_v16 = vsel %vm569_vm2, %v5935_v15, 0.0 }
 0x720   : > { %v6482_v17 = vpop.eup %5936 }
 0x721   : > { %v3097_v19 = vsel %vm569_vm2, %v6482_v17, 0.0 }
 0x72a   : > { %3679 = vrot.lane.b32.xlu1 %v6158_v12, %s6032_s30 }
 0x734   : > { %3601 = vrot.lane.b32.xlu0 %v6155_v8, %s6032_s30 }
 0x74e   : > { %3095 = vadd.xlane.f32.xlu1 %v3094_v16 }
 0x753   : > { %3098 = vadd.xlane.f32.xlu0 %v3097_v19 }
 0x75f   : > { %3677 = vrot.lane.b32.xlu1 %v6158_v12, %s6033_s16 }
 0x763   : > { %3835 = vrot.lane.b32.xlu1 %v6164_v18, %s6032_s30 }
 0x767   : > { %3833 = vrot.lane.b32.xlu1 %v6164_v18, %s6033_s16 }
 0x769   : > { %3599 = vrot.lane.b32.xlu0 %v6155_v8, %s6033_s16 }
 0x76b   : > { %3991 = vrot.lane.b32.xlu1 %v6169_v23, %s6032_s30 }
 0x76d   : > { %3757 = vrot.lane.b32.xlu0 %v6161_v14, %s6032_s30 }
 0x76f   : > { %3989 = vrot.lane.b32.xlu1 %v6169_v23, %s6033_s16 }
 0x771   : > { %3755 = vrot.lane.b32.xlu0 %v6161_v14, %s6033_s16 }
 0x775   : > { %3913 = vrot.lane.b32.xlu0 %v6167_v20, %s6032_s30 }
 0x779   : > { %3911 = vrot.lane.b32.xlu0 %v6167_v20, %s6033_s16 }
 0x7a2   : > { %v3084_v22 = vpop.xlane.xlu1 %3083 }
 0x7a3   : > { %5938 = vrcp.f32 %v3084_v22 }
 0x7a6   : > { %v3090_v25 = vpop.xlane.xlu1 %3089 }
 0x7a7   : > { %5940 = vrcp.f32 %v3090_v25  ;;  %v3087_v26 = vpop.xlane.xlu0 %3086 }
 0x7a8   : > { %5942 = vrcp.f32 %v3087_v26 }
 0x7aa   : > { %v3680_v37 = vpop.permute.xlu1 %3679 }
 0x7ab   : > { %v3093_v27 = vpop.xlane.xlu0 %3092 }
 0x7ac   : > { %5944 = vrcp.f32 %v3093_v27 }
 0x7ad   : > { %v5939_v28 = vpop.eup %5938 }
 0x7ae   : > { %v3101_v29 = vmul.f32 %v5939_v28, %v5927_v55 }
 0x7af   : > { %v3602_v39 = vpop.permute.xlu0 %3601 }
 0x7b0   : > { %5694 = vmatmul.mubr.msk.f32.vlgmr.msra.gmra.mrb[36].mxu1 %vm569_vm2, %v3101_v29 }
 0x7b1   : > { %v5941_v30 = vpop.eup %5940  ;;  %5702 = vmatpush3.msra.mxu1 %v6471_v41  ;;  %5703 = vmatprep.mubr.msk.f32.mxu1 %vm6022_vm0, %v6021_v1 }
 0x7b2   : > { %v5943_v31 = vpop.eup %5942  ;;  %v3105_v32 = vmul.f32 %v5941_v30, %v5929_v57  ;;  %5711 = vmatprep.subr.mxu1 %v6021_v1 }
 0x7b3   : > { %v3103_v33 = vmul.f32 %v5943_v31, %v5931_v58 }
 0x7b4   : > { %5704 = vmatmul.mubr.msk.f32.vlgmr.msra.gmra.mrb[38].mxu1 %vm569_vm2, %v3105_v32 }
 0x7b5   : > { %5699 = vmatmul.mubr.msk.f32.vlgmr.msra.gmra.mrb[36].mxu0 %vm569_vm2, %v3103_v33  ;;  %5712 = vmatpush3.msra.mxu1 %v3417_v24 }
 0x7b6   : > { %5707 = vmatpush3.msra.mxu0 %v6473_v43  ;;  %5708 = vmatprep.mubr.msk.f32.mxu0 %vm6022_vm0, %v6021_v1  ;;  %v5945_v35 = vpop.eup %5944 }
 0x7b7   : > { %5716 = vmatprep.subr.mxu0 %v6021_v1  ;;  %5713 = vmatprep.mubr.msk.f32.mxu1 %vm6022_vm0, %v6021_v1  ;;  %v3107_v36 = vmul.f32 %v5945_v35, %v5933_v62 }
 0x7b8   : > { %5721 = vmatprep.subr.mxu1 %v6021_v1 }
 0x7b9   : > { %5709 = vmatmul.mubr.msk.f32.vlgmr.msra.gmra.mrb[38].mxu0 %vm569_vm2, %v3107_v36 }
 0x7ba   : > { %5717 = vmatpush3.msra.mxu0 %v3493_v21  ;;  %5718 = vmatprep.mubr.msk.f32.mxu0 %vm6022_vm0, %v6021_v1 }
 0x7bb   : > { %5726 = vmatprep.subr.mxu0 %v6021_v1 }
 0x7db   : > { %v3096_v38 = vpop.xlane.xlu1 %3095 }
 0x7dc   : > { %5946 = vrcp.f32 %v3096_v38 }
 0x7df   : > { %v3678_v41 = vpop.permute.xlu1 %3677 }
 0x7e0   : > { %v3099_v40 = vpop.xlane.xlu0 %3098 }
 0x7e1   : > { %5948 = vrcp.f32 %v3099_v40 }
 0x7e3   : > { %v3836_v45 = vpop.permute.xlu1 %3835 }
 0x7e4   : > { %v3600_v42 = vpop.permute.xlu0 %3599 }
 0x7e6   : > { %v5947_v43 = vpop.eup %5946 }
 0x7e7   : > { %v3109_v44 = vmul.f32 %v5947_v43, %v5935_v15  ;;  %v3834_v50 = vpop.permute.xlu1 %3833 }
 0x7e8   : > { %v3758_v46 = vpop.permute.xlu0 %3757 }
 0x7e9   : > { %5714 = vmatmul.mubr.msk.f32.vlgmr.msra.gmra.mrb[40].mxu1 %vm569_vm2, %v3109_v44 }
 0x7ea   : > { %5722 = vmatpush3.xpose.msk.msra.mxu1 %vm569_vm2, %v3602_v39  ;;  %5723 = vmatprep.mubr.msk.f32.mxu1 %vm6022_vm0, %v6021_v1 }
 0x7eb   : > { %5731 = vmatprep.subr.mxu1 %v6021_v1  ;;  %v5949_v47 = vpop.eup %5948  ;;  %v3992_v52 = vpop.permute.xlu1 %3991 }
 0x7ec   : > { %v3111_v48 = vmul.f32 %v5949_v47, %v6482_v17  ;;  %v3756_v49 = vpop.permute.xlu0 %3755 }
 0x7ed   : > { %5724 = vmatmul.mubr.msk.f32.vlgmr.msra.gmra.mrb[42].mxu1 %vm569_vm2, %v3600_v42 }
 0x7ee   : > { %5732 = vmatpush3.xpose.msk.msra.mxu1 %vm569_vm2, %v3758_v46  ;;  %5733 = vmatprep.mubr.msk.f32.mxu1 %vm6022_vm0, %v6021_v1 }
 0x7ef   : > { %5719 = vmatmul.mubr.msk.f32.vlgmr.msra.gmra.mrb[40].mxu0 %vm569_vm2, %v3111_v48  ;;  %5741 = vmatprep.subr.mxu1 %v6021_v1  ;;  %v3990_v54 = vpop.permute.xlu1 %3989 }
 0x7f0   : > { %5727 = vmatpush3.xpose.msk.msra.mxu0 %vm569_vm2, %v3680_v37  ;;  %5728 = vmatprep.mubr.msk.f32.mxu0 %vm6022_vm0, %v6021_v1  ;;  %v3914_v51 = vpop.permute.xlu0 %3913 }
 0x7f1   : > { %5736 = vmatprep.subr.mxu0 %v6021_v1  ;;  %5734 = vmatmul.mubr.msk.f32.vlgmr.msra.gmra.mrb[44].mxu1 %vm569_vm2, %v3756_v49 }
 0x7f2   : > { %5742 = vmatpush3.xpose.msk.msra.mxu1 %vm569_vm2, %v3914_v51  ;;  %5743 = vmatprep.mubr.msk.f32.mxu1 %vm6022_vm0, %v6021_v1 }
 0x7f3   : > { %5729 = vmatmul.mubr.msk.f32.vlgmr.msra.gmra.mrb[42].mxu0 %vm569_vm2, %v3678_v41  ;;  %5751 = vmatprep.subr.mxu1 %v6021_v1 }
 0x7f4   : > { %5737 = vmatpush3.xpose.msk.msra.mxu0 %vm569_vm2, %v3836_v45  ;;  %5738 = vmatprep.mubr.msk.f32.mxu0 %vm6022_vm0, %v6021_v1  ;;  %v3912_v53 = vpop.permute.xlu0 %3911 }
 0x7f5   : > { %5746 = vmatprep.subr.mxu0 %v6021_v1  ;;  %5744 = vmatmul.mubr.msk.f32.vlgmr.msra.gmra.mrb[46].mxu1 %vm569_vm2, %v3912_v53 }
 0x7f6   : > { %5753 = vmatprep.mubr.msk.f32.mxu1 %vm6022_vm0, %v6021_v1 }
 0x7f7   : > { %5739 = vmatmul.mubr.msk.f32.vlgmr.msra.gmra.mrb[44].mxu0 %vm569_vm2, %v3834_v50 }
 0x7f8   : > { %5747 = vmatpush3.xpose.msk.msra.mxu0 %vm569_vm2, %v3992_v52  ;;  %5748 = vmatprep.mubr.msk.f32.mxu0 %vm6022_vm0, %v6021_v1 }
 0x7f9   : > { %5756 = vmatprep.subr.mxu0 %v6021_v1 }
 0x7fb   : > { %5749 = vmatmul.mubr.msk.f32.vlgmr.msra.gmra.mrb[46].mxu0 %vm569_vm2, %v3990_v54 }
 0x7fc   : > { %5758 = vmatprep.mubr.msk.f32.mxu0 %vm6022_vm0, %v6021_v1 }
 0x883   : > { %v6551_v55 = vpop.f32.mrb[36].mxu1 }
 0x884   : > { %v5695_v56 = vpop.f32.mrb[37].mxu1 }
 0x887   : > { %v6553_v57 = vpop.f32.mrb[38].mxu1 }
 0x888   : > { %v6555_v58 = vpop.f32.mrb[36].mxu0  ;;  %v5705_v59 = vpop.f32.mrb[39].mxu1 }
 0x889   : > { %v5700_v60 = vpop.f32.mrb[37].mxu0 }
 0x88c   : > { %v6557_v62 = vpop.f32.mrb[38].mxu0 }
 0x88d   : > { %v5710_v2 = vpop.f32.mrb[39].mxu0 }
 0x8bc   : > { %v6559_v3 = vpop.f32.mrb[40].mxu1 }
 0x8bd   : > { %v5715_v6 = vpop.f32.mrb[41].mxu1 }
 0x8c0   : > { %v3673_v7 = vpop.f32.mrb[42].mxu1 }
 0x8c1   : > { %v3674_v10 = vadd.f32 %v3673_v7, %v6209_v34  ;;  %v5725_v11 = vpop.f32.mrb[43].mxu1 }
 0x8c2   : > { %v6562_v13 = vpop.f32.mrb[40].mxu0 }
 0x8c3   : > { %v5720_v15 = vpop.f32.mrb[41].mxu0  ;;  %v4067_v16 = vsel %vm569_vm2, %v3674_v10, -inf }
 0x8c4   : > { %4068 = vmax.xlane.f32.xlu0 %v4067_v16  ;;  %v3829_v17 = vpop.f32.mrb[44].mxu1 }
 0x8c5   : > { %v3830_v19 = vadd.f32 %v3829_v17, %v6209_v34  ;;  %v5735_v21 = vpop.f32.mrb[45].mxu1 }
 0x8c6   : > { %v3751_v22 = vpop.f32.mrb[42].mxu0 }
 0x8c7   : > { %v3752_v24 = vadd.f32 %v3751_v22, %v6209_v34  ;;  %v5730_v25 = vpop.f32.mrb[43].mxu0  ;;  %v4073_v26 = vsel %vm569_vm2, %v3830_v19, -inf }
 0x8c8   : > { %4074 = vmax.xlane.f32.xlu0 %v4073_v26  ;;  %v3985_v27 = vpop.f32.mrb[46].mxu1 }
 0x8c9   : > { %v4070_v28 = vsel %vm569_vm2, %v3752_v24, -inf  ;;  %v3986_v29 = vadd.f32 %v3985_v27, %v6209_v34  ;;  %v5745_v31 = vpop.f32.mrb[47].mxu1 }
 0x8ca   : > { %4071 = vmax.xlane.f32.xlu1 %v4070_v28  ;;  %v3907_v30 = vpop.f32.mrb[44].mxu0 }
 0x8cb   : > { %v3908_v32 = vadd.f32 %v3907_v30, %v6209_v34  ;;  %v5740_v33 = vpop.f32.mrb[45].mxu0  ;;  %v4079_v35 = vsel %vm569_vm2, %v3986_v29, -inf }
 0x8cd   : > { %v4076_v36 = vsel %vm569_vm2, %v3908_v32, -inf }
 0x8ce   : > { %4080 = vmax.xlane.f32.xlu1 %v4079_v35  ;;  %4077 = vmax.xlane.f32.xlu0 %v4076_v36  ;;  %v4063_v37 = vpop.f32.mrb[46].mxu0 }
 0x8cf   : > { %v4064_v38 = vadd.f32 %v4063_v37, %v6209_v34  ;;  %v5750_v39 = vpop.f32.mrb[47].mxu0 }
 0x8d1   : > { %v4082_v40 = vsel %vm569_vm2, %v4064_v38, -inf }
 0x8d2   : > { %4083 = vmax.xlane.f32.xlu0 %v4082_v40 }
 0x8df   : > { %4133 = vrot.lane.b32.xlu1 %v6155_v8, %s6034_s17 }
 0x951   : > { %v4069_v41 = vpop.xlane.xlu0 %4068 }
 0x952   : > { %v4085_v42 = vsub.f32 %v3674_v10, %v4069_v41 }
 0x954   : > { %v4091_v43 = vmul.f32 1.442695, %v4085_v42 }
 0x955   : > { %v4075_v51 = vpop.xlane.xlu0 %4074 }
 0x956   : > { %5950 = vpow2.f32 %v4091_v43  ;;  %v4087_v53 = vsub.f32 %v3830_v19, %v4075_v51 }
 0x957   : > { %v4072_v44 = vpop.xlane.xlu1 %4071 }
 0x958   : > { %v4086_v45 = vsub.f32 %v3752_v24, %v4072_v44  ;;  %v4095_v59 = vmul.f32 1.442695, %v4087_v53  ;;  %v5867_v44 = vld [vmem:[%s6829_s3] sm:$0xff]  }
 0x95a   : > { %v4093_v46 = vmul.f32 1.442695, %v4086_v45  ;;  %v5868_v45 = vld [vmem:[%s6829_s3 + $0x8] sm:$0xff]  }
 0x95b   : > { %v4081_v47 = vpop.xlane.xlu1 %4080  ;;  %v4078_v52 = vpop.xlane.xlu0 %4077 }
 0x95c   : > { %5952 = vpow2.f32 %v4093_v46  ;;  %v4088_v54 = vsub.f32 %v3908_v32, %v4078_v52  ;;  %v4089_v60 = vsub.f32 %v3986_v29, %v4081_v47 }
 0x95d   : > { %5954 = vpow2.f32 %v4095_v59 }
 0x95e   : > { %v4097_v2 = vmul.f32 1.442695, %v4088_v54  ;;  %v4099_v7 = vmul.f32 1.442695, %v4089_v60 }
 0x95f   : > { %v4134_v48 = vpop.permute.xlu1 %4133  ;;  %v4084_v56 = vpop.xlane.xlu0 %4083 }
 0x960   : > { %v5951_v49 = vpop.eup %5950  ;;  %5752 = vmatpush3.msra.mxu1 %v4134_v48  ;;  %v4090_v6 = vsub.f32 %v4064_v38, %v4084_v56  ;;  %5956 = vpow2.f32 %v4097_v2 }
 0x961   : > { %v4103_v34 = vsel %vm569_vm2, %v5951_v49, 0.0  ;;  %5761 = vmatprep.subr.mxu1 %v6021_v1  ;;  %5958 = vpow2.f32 %v4099_v7 }
 0x962   : > { %4104 = vadd.xlane.f32.xlu1 %v4103_v34  ;;  %v4101_v10 = vmul.f32 1.442695, %v4090_v6 }
 0x964   : > { %5960 = vpow2.f32 %v4101_v10 }
 0x966   : > { %v5953_v50 = vpop.eup %5952 }
 0x967   : > { %v4106_v8 = vsel %vm569_vm2, %v5953_v50, 0.0 }
 0x968   : > { %4107 = vadd.xlane.f32.xlu0 %v4106_v8 }
 0x973   : > { %4285 = vrot.lane.b32.xlu1 %v6161_v14, %s6034_s17  ;;  %v5955_v14 = vpop.eup %5954 }
 0x974   : > { %v4109_v11 = vsel %vm569_vm2, %v5955_v14, 0.0 }
 0x977   : > { %4361 = vrot.lane.b32.xlu1 %v6164_v18, %s6034_s17  ;;  %v5957_v18 = vpop.eup %5956 }
 0x978   : > { %v6587_v15 = vpop.eup %5958 }
 0x979   : > { %v6590_v16 = vpop.eup %5960  ;;  %v4115_v17 = vsel %vm569_vm2, %v6587_v15, 0.0 }
 0x97a   : > { %v4118_v19 = vsel %vm569_vm2, %v6590_v16, 0.0 }
 0x97e   : > { %4209 = vrot.lane.b32.xlu0 %v6158_v12, %s6034_s17  ;;  %v4112_v12 = vsel %vm569_vm2, %v5957_v18, 0.0 }
 0x99b   : > { %4110 = vadd.xlane.f32.xlu1 %v4109_v11 }
 0x99d   : > { %4113 = vadd.xlane.f32.xlu0 %v4112_v12 }
 0x99f   : > { %4116 = vadd.xlane.f32.xlu1 %v4115_v17 }
 0x9a1   : > { %4119 = vadd.xlane.f32.xlu0 %v4118_v19 }
 0x9b0   : > { %4513 = vrot.lane.b32.xlu1 %v6169_v23, %s6034_s17 }
 0x9b4   : > { %2555 = vrot.lane.b32.xlu1 %v6447_v0, %s6035_s19 }
 0x9b7   : > { %4437 = vrot.lane.b32.xlu0 %v6167_v20, %s6034_s17 }
 0x9b8   : > { %3576 = vrot.lane.b32.xlu1 %v6555_v58, %s6036_s20 }
 0x9bb   : > { %2553 = vrot.lane.b32.xlu0 %v6443_v61, %s6035_s19 }
 0x9bc   : > { %2559 = vrot.lane.b32.xlu1 %v6451_v5, %s6035_s19 }
 0x9bf   : > { %3574 = vrot.lane.b32.xlu0 %v6551_v55, %s6036_s20 }
 0x9c0   : > { %3580 = vrot.lane.b32.xlu1 %v6557_v62, %s6036_s20 }
 0x9c3   : > { %2557 = vrot.lane.b32.xlu0 %v6445_v63, %s6035_s19 }
 0x9c7   : > { %3578 = vrot.lane.b32.xlu0 %v6553_v57, %s6036_s20 }
 0x9ef   : > { %v4105_v20 = vpop.xlane.xlu1 %4104 }
 0x9f0   : > { %5962 = vrcp.f32 %v4105_v20 }
 0x9f3   : > { %v4286_v55 = vpop.permute.xlu1 %4285 }
 0x9f5   : > { %v4108_v23 = vpop.xlane.xlu0 %4107 }
 0x9f6   : > { %5964 = vrcp.f32 %v4108_v23  ;;  %v5369_v23 = vld [vmem:[%s6830_s4] ss:$0 sm:$0xff] }
 0x9f7   : > { %v4362_v58 = vpop.permute.xlu1 %4361 }
 0x9f9   : > { %v4210_v61 = vpop.permute.xlu0 %4209 }
 0x9fa   : > { %v5963_v0 = vpop.eup %5962  ;;  %5757 = vmatpush3.msra.mxu0 %v4210_v61  ;;  %v6010_v61 = vld [vmem:[%s6138_s18] sm:$0xff]  }
 0x9fb   : > { %v4122_v5 = vmul.f32 %v5963_v0, %v5951_v49  ;;  %5766 = vmatprep.subr.mxu0 %v6021_v1  ;;  %v451_v0 = vunpack.c.l.bf16 %v6010_v61 }
 0x9fd   : > { %5754 = vmatmul.mubr.msk.f32.vlgmr.msra.gmra.mrb[48].mxu1 %vm569_vm2, %v4122_v5 }
 0x9fe   : > { %5762 = vmatpush3.msra.mxu1 %v4286_v55  ;;  %5763 = vmatprep.mubr.msk.f32.mxu1 %vm6022_vm0, %v6021_v1 }
 0x9ff   : > { %5771 = vmatprep.subr.mxu1 %v6021_v1 }
 0xa00   : > { %v5965_v63 = vpop.eup %5964 }
 0xa01   : > { %v4124_v57 = vmul.f32 %v5965_v63, %v5953_v50 }
 0xa03   : > { %5759 = vmatmul.mubr.msk.f32.vlgmr.msra.gmra.mrb[48].mxu0 %vm569_vm2, %v4124_v57  ;;  %v452_v57 = vunpack.c.h.bf16 %v6010_v61 }
 0xa04   : > { %5767 = vmatpush3.msra.mxu0 %v4362_v58  ;;  %5768 = vmatprep.mubr.msk.f32.mxu0 %vm6022_vm0, %v6021_v1 }
 0xa05   : > { %5776 = vmatprep.subr.mxu0 %v6021_v1 }
 0xa28   : > { %v4111_v62 = vpop.xlane.xlu1 %4110 }
 0xa29   : > { %5966 = vrcp.f32 %v4111_v62 }
 0xa2a   : > { %v4114_v21 = vpop.xlane.xlu0 %4113 }
 0xa2b   : > { %5968 = vrcp.f32 %v4114_v21 }
 0xa2c   : > { %v4117_v22 = vpop.xlane.xlu1 %4116 }
 0xa2d   : > { %5970 = vrcp.f32 %v4117_v22 }
 0xa2e   : > { %v4120_v24 = vpop.xlane.xlu0 %4119 }
 0xa2f   : > { %5972 = vrcp.f32 %v4120_v24 }
 0xa30   : > { %v4514_v25 = vpop.permute.xlu1 %4513 }
 0xa32   : > { %v4438_v26 = vpop.permute.xlu0 %4437 }
 0xa33   : > { %v5967_v27 = vpop.eup %5966 }
 0xa34   : > { %v4126_v28 = vmul.f32 %v5967_v27, %v5955_v14  ;;  %v2556_v29 = vpop.permute.xlu1 %2555  ;;  %v6011_v27 = vld [vmem:[%s6138_s18 + $0x8] sm:$0xff]  }
 0xa35   : > { %v5969_v30 = vpop.eup %5968  ;;  %2573 = vst.msk [vmem:[#allocation2 + $0x8] sm:$0xff] %vm2571_vm4, %v2556_v29 }
 0xa36   : > { %v4128_v31 = vmul.f32 %v5969_v30, %v5957_v18  ;;  %v2554_v32 = vpop.permute.xlu0 %2553  ;;  %5764 = vmatmul.mubr.msk.f32.vlgmr.msra.gmra.mrb[50].mxu1 %vm569_vm2, %v4126_v28  ;;  %v453_v28 = vunpack.c.l.bf16 %v6011_v27 }
 0xa37   : > { %v5971_v33 = vpop.eup %5970  ;;  %2572 = vst.msk [vmem:[#allocation2] sm:$0xff] %vm2571_vm4, %v2554_v32  ;;  %5772 = vmatpush3.msra.mxu1 %v4438_v26  ;;  %5773 = vmatprep.mubr.msk.f32.mxu1 %vm6022_vm0, %v6021_v1  ;;  %v454_v32 = vunpack.c.h.bf16 %v6011_v27 }
 0xa38   : > { %v4130_v35 = vmul.f32 %v5971_v33, %v6587_v15  ;;  %5769 = vmatmul.mubr.msk.f32.vlgmr.msra.gmra.mrb[50].mxu0 %vm569_vm2, %v4128_v31  ;;  %v3577_v36 = vpop.permute.xlu1 %3576  ;;  %5833 = vmatprep.subr.bf16.mxu1 %v6021_v1 }
 0xa39   : > { %v5973_v37 = vpop.eup %5972  ;;  %5777 = vmatpush3.msra.mxu0 %v4514_v25  ;;  %3594 = vst.msk [vmem:[#allocation2 + $0x8] sm:$0xff] %vm3592_vm5, %v3577_v36  ;;  %5778 = vmatprep.mubr.msk.f32.mxu0 %vm6022_vm0, %v6021_v1 }
 0xa3a   : > { %v4132_v38 = vmul.f32 %v5973_v37, %v6590_v16  ;;  %v3575_v39 = vpop.permute.xlu0 %3574  ;;  %5774 = vmatmul.mubr.msk.f32.vlgmr.msra.gmra.mrb[52].mxu1 %vm569_vm2, %v4130_v35  ;;  %5781 = vmatprep.subr.bf16.mxu0 %v6021_v1 }
 0xa3b   : > { %3593 = vst.msk [vmem:[#allocation2] sm:$0xff] %vm3592_vm5, %v3575_v39  ;;  %5789 = vmatprep.mubr.msk.bf16.mxu1 %vm6022_vm0, %v6021_v1  ;;  %5835 = vmatpush3.bf16.msra.mxu1 %v5867_v44 }
 0xa3c   : > { %5779 = vmatmul.mubr.msk.f32.vlgmr.msra.gmra.mrb[52].mxu0 %vm569_vm2, %v4132_v38  ;;  %v2560_v40 = vpop.permute.xlu1 %2559  ;;  %5834 = vmatprep.subr.bf16.mxu1 %v6021_v1 }
 0xa3d   : > { %2575 = vst.msk [vmem:[#allocation2 + $0x18] sm:$0xff] %vm2571_vm4, %v2560_v40  ;;  %5785 = vmatprep.mubr.msk.bf16.mxu0 %vm6022_vm0, %v6021_v1  ;;  %5782 = vmatpush3.bf16.msra.mxu0 %v5867_v44  ;;  %v6012_v40 = vld [vmem:[%s6138_s18 + $0x10] sm:$0xff]  }
 0xa3e   : > { %v2558_v41 = vpop.permute.xlu0 %2557  ;;  %5783 = vmatprep.subr.bf16.mxu0 %v6021_v1 }
 0xa3f   : > { %2574 = vst.msk [vmem:[#allocation2 + $0x10] sm:$0xff] %vm2571_vm4, %v2558_v41  ;;  %5836 = vmatpush3.bf16.msra.mxu1 %v5868_v45  ;;  %v455_v41 = vunpack.c.l.bf16 %v6012_v40 }
 0xa40   : > { %v3581_v42 = vpop.permute.xlu1 %3580  ;;  %5813 = vmatprep.subr.bf16.mxu1 %v6021_v1 }
 0xa41   : > { %3596 = vst.msk [vmem:[#allocation2 + $0x18] sm:$0xff] %vm3592_vm5, %v3581_v42  ;;  %5784 = vmatpush3.bf16.msra.mxu0 %v5868_v45  ;;  %v456_v45 = vunpack.c.h.bf16 %v6012_v40 }
 0xa42   : > { %v3579_v43 = vpop.permute.xlu0 %3578  ;;  %5797 = vmatprep.subr.bf16.mxu0 %v6021_v1 }
 0xa43   : > { %3595 = vst.msk [vmem:[#allocation2 + $0x10] sm:$0xff] %vm3592_vm5, %v3579_v43 }
 0xad0   : > { %v4205_v46 = vpop.f32.mrb[48].mxu1 }
 0xad1   : > { %v5755_v47 = vpop.f32.mrb[49].mxu1  ;;  %4595 = vrot.lane.b32.xlu0 %v4205_v46, %s6037_s26 }
 0xad5   : > { %2561 = vrot.lane.b32.xlu0 %v6449_v4, %s6035_s19 }
 0xad6   : > { %v4281_v48 = vpop.f32.mrb[48].mxu0 }
 0xad7   : > { %4597 = vrot.lane.b32.xlu1 %v4281_v48, %s6037_s26  ;;  %v5760_v49 = vpop.f32.mrb[49].mxu0 }
 0xadb   : > { %2563 = vrot.lane.b32.xlu1 %v6453_v9, %s6035_s19 }
 0xb09   : > { %v4357_v34 = vpop.f32.mrb[50].mxu1 }
 0xb0a   : > { %v5765_v50 = vpop.f32.mrb[51].mxu1  ;;  %4599 = vrot.lane.b32.xlu0 %v4357_v34, %s6037_s26 }
 0xb0b   : > { %v4433_v8 = vpop.f32.mrb[50].mxu0 }
 0xb0c   : > { %4601 = vrot.lane.b32.xlu1 %v4433_v8, %s6037_s26  ;;  %v5770_v51 = vpop.f32.mrb[51].mxu0 }
 0xb0d   : > { %v4509_v52 = vpop.f32.mrb[52].mxu1 }
 0xb0e   : > { %3582 = vrot.lane.b32.xlu0 %v6559_v3, %s6036_s20  ;;  %v5775_v53 = vpop.f32.mrb[53].mxu1 }
 0xb0f   : > { %v4585_v54 = vpop.f32.mrb[52].mxu0 }
 0xb10   : > { %3584 = vrot.lane.b32.xlu1 %v6562_v13, %s6036_s20  ;;  %v5780_v4 = vpop.f32.mrb[53].mxu0 }
 0xb12   : > { %4603 = vrot.lane.b32.xlu0 %v4509_v52, %s6037_s26 }
 0xb14   : > { %4605 = vrot.lane.b32.xlu1 %v4585_v54, %s6037_s26 }
 0xb43   : > { %v4596_v9 = vpop.permute.xlu0 %4595 }
 0xb44   : > { %4614 = vst.msk [vmem:[#allocation2] sm:$0xff] %vm4613_vm6, %v4596_v9 }
 0xb47   : > { %v2562_v56 = vpop.permute.xlu0 %2561 }
 0xb48   : > { %2576 = vst.msk [vmem:[#allocation2 + $0x20] sm:$0xff] %vm2571_vm4, %v2562_v56 }
 0xb49   : > { %v4598_v59 = vpop.permute.xlu1 %4597 }
 0xb4a   : > { %4615 = vst.msk [vmem:[#allocation2 + $0x8] sm:$0xff] %vm4613_vm6, %v4598_v59 }
 0xb4b   : > { %v4620_v3 = vld [vmem:[#allocation2] sm:$0xff] }
 0xb4d   : > { %v2564_v60 = vpop.permute.xlu1 %2563 }
 0xb4e   : > { %2577 = vst.msk [vmem:[#allocation2 + $0x28] sm:$0xff] %vm2571_vm4, %v2564_v60 }
 0xb51   : > { %v4621_v2 = vld [vmem:[#allocation2 + $0x8] sm:$0xff] }
 0xb52   : > { %v4626_v6 = vpack.c.bf16 %v4621_v2, %v4620_v3 }
 0xb54   : > { %5786 = vmatmul.mubr.msk.bf16.vlgmr.msra.gmra.mrb[56].mxu0 %vm495_vm1, %v4626_v6  ;;  %v5869_v6 = vld [vmem:[%s6833_s7] sm:$0xff]  }
 0xb55   : > { %5801 = vmatprep.mubr.msk.bf16.mxu0 %vm6022_vm0, %v6021_v1  ;;  %5798 = vmatpush3.bf16.msra.mxu0 %v5869_v6 }
 0xb56   : > { %5799 = vmatprep.subr.bf16.mxu0 %v6021_v1 }
 0xb7c   : > { %v4600_v13 = vpop.permute.xlu0 %4599 }
 0xb7d   : > { %4616 = vst.msk [vmem:[#allocation2 + $0x10] sm:$0xff] %vm4613_vm6, %v4600_v13  ;;  %v5870_v13 = vld [vmem:[%s6833_s7 + $0x8] sm:$0xff]  }
 0xb7e   : > { %v4602_v7 = vpop.permute.xlu1 %4601  ;;  %5800 = vmatpush3.bf16.msra.mxu0 %v5870_v13 }
 0xb7f   : > { %4617 = vst.msk [vmem:[#allocation2 + $0x18] sm:$0xff] %vm4613_vm6, %v4602_v7 }
 0xb80   : > { %v3583_v10 = vpop.permute.xlu0 %3582 }
 0xb81   : > { %3597 = vst.msk [vmem:[#allocation2 + $0x20] sm:$0xff] %vm3592_vm5, %v3583_v10 }
 0xb82   : > { %v3585_v14 = vpop.permute.xlu1 %3584 }
 0xb83   : > { %3598 = vst.msk [vmem:[#allocation2 + $0x28] sm:$0xff] %vm3592_vm5, %v3585_v14 }
 0xb84   : > { %v4604_v18 = vpop.permute.xlu0 %4603  ;;  %v4622_v11 = vld [vmem:[#allocation2 + $0x10] sm:$0xff] }
 0xb85   : > { %4618 = vst.msk [vmem:[#allocation2 + $0x20] sm:$0xff] %vm4613_vm6, %v4604_v18 }
 0xb86   : > { %v4606_v15 = vpop.permute.xlu1 %4605  ;;  %v4623_v12 = vld [vmem:[#allocation2 + $0x18] sm:$0xff] }
 0xb87   : > { %4619 = vst.msk [vmem:[#allocation2 + $0x28] sm:$0xff] %vm4613_vm6, %v4606_v15  ;;  %v4627_v16 = vpack.c.bf16 %v4623_v12, %v4622_v11 }
 0xb89   : > { %5790 = vmatmul.mubr.msk.bf16.vlgmr.msra.gmra.mrb[56].mxu1 %vm495_vm1, %v4627_v16 }
 0xb8a   : > { %5793 = vmatprep.mubr.msk.bf16.mxu1 %vm6022_vm0, %v6021_v1 }
 0xb8c   : > { %v4624_v17 = vld [vmem:[#allocation2 + $0x20] sm:$0xff] }
 0xb8e   : > { %v4625_v19 = vld [vmem:[#allocation2 + $0x28] sm:$0xff] }
 0xb8f   : > { %v4628_v20 = vpack.c.bf16 %v4625_v19, %v4624_v17 }
 0xb91   : > { %5794 = vmatmul.mubr.msk.bf16.gmra.mrb[60].mxu1 %vm495_vm1, %v4628_v20 }
 0xb92   : > { %5821 = vmatprep.mubr.msk.bf16.mxu1 %vm6022_vm0, %v6021_v1 }
 0xc27   : > { %v4695_v5 = vpop.f32.mrb[56].mxu0 }
 0xc28   : > { %v4696_v55 = vadd.f32 %v5369_v23, %v4695_v5  ;;  %v5787_v63 = vpop.f32.mrb[57].mxu0 }
 0xc29   : > { %v4698_v58 = vpop.f32.mrb[58].mxu0 }
 0xc2a   : > { %v4718_v62 = vadd.f32 %v4696_v55, %v451_v0  ;;  %v4699_v21 = vadd.f32 %v5369_v23, %v4698_v58  ;;  %v5788_v22 = vpop.f32.mrb[59].mxu0 }
 0xc2c   : > { %v4719_v24 = vadd.f32 %v4699_v21, %v452_v57  ;;  %v4726_v25 = vsel %vm495_vm1, %v4718_v62, 0.0 }
 0xc2d   : > { %4727 = vadd.xlane.f32.xlu0 %v4726_v25 }
 0xc2e   : > { %v4729_v26 = vsel %vm495_vm1, %v4719_v24, 0.0 }
 0xc2f   : > { %4730 = vadd.xlane.f32.xlu1 %v4729_v26 }
 0xc5c   : > { %v4703_v29 = vpop.f32.mrb[56].mxu1 }
 0xc5d   : > { %v4704_v30 = vadd.f32 %v5369_v23, %v4703_v29  ;;  %v5791_v31 = vpop.f32.mrb[57].mxu1  ;;  %v5375_v29 = vld [vmem:[%s6831_s5] ss:$0 sm:$0xff] }
 0xc5e   : > { %v4706_v33 = vpop.f32.mrb[58].mxu1 }
 0xc5f   : > { %v4720_v35 = vadd.f32 %v4704_v30, %v453_v28  ;;  %v4707_v36 = vadd.f32 %v5369_v23, %v4706_v33  ;;  %v5792_v37 = vpop.f32.mrb[59].mxu1 }
 0xc61   : > { %v4721_v38 = vadd.f32 %v4707_v36, %v454_v32  ;;  %v4732_v39 = vsel %vm495_vm1, %v4720_v35, 0.0 }
 0xc62   : > { %4733 = vadd.xlane.f32.xlu0 %v4732_v39 }
 0xc63   : > { %v4735_v46 = vsel %vm495_vm1, %v4721_v38, 0.0 }
 0xc64   : > { %v4711_v42 = vpop.f32.mrb[60].mxu1 }
 0xc65   : > { %v4712_v43 = vadd.f32 %v5369_v23, %v4711_v42  ;;  %v5795_v44 = vpop.f32.mrb[61].mxu1 }
 0xc66   : > { %v4714_v47 = vpop.f32.mrb[62].mxu1  ;;  %4736 = vadd.xlane.f32.xlu0 %v4735_v46 }
 0xc67   : > { %v4722_v48 = vadd.f32 %v4712_v43, %v455_v41  ;;  %v4715_v49 = vadd.f32 %v5369_v23, %v4714_v47  ;;  %v5796_v34 = vpop.f32.mrb[63].mxu1 }
 0xc69   : > { %v4723_v50 = vadd.f32 %v4715_v49, %v456_v45  ;;  %v4738_v8 = vsel %vm495_vm1, %v4722_v48, 0.0 }
 0xc6a   : > { %4739 = vadd.xlane.f32.xlu1 %v4738_v8 }
 0xc6b   : > { %v4741_v51 = vsel %vm495_vm1, %v4723_v50, 0.0 }
 0xc6c   : > { %4742 = vadd.xlane.f32.xlu0 %v4741_v51 }
 0xcba   : > { %v4728_v52 = vpop.xlane.xlu0 %4727 }
 0xcbb   : > { %v4745_v53 = vmul.f32 0.03125, %v4728_v52 }
 0xcbc   : > { %v4731_v54 = vpop.xlane.xlu1 %4730 }
 0xcbd   : > { %v4751_v4 = vsub.f32 %v4718_v62, %v4745_v53  ;;  %v4746_v9 = vmul.f32 0.03125, %v4731_v54 }
 0xcbf   : > { %v4752_v56 = vsub.f32 %v4719_v24, %v4746_v9  ;;  %v4757_v59 = vmul.f32 %v4751_v4, %v4751_v4 }
 0xcc1   : > { %v4763_v60 = vsel %vm495_vm1, %v4757_v59, 0.0  ;;  %v4758_v3 = vmul.f32 %v4752_v56, %v4752_v56 }
 0xcc2   : > { %4764 = vadd.xlane.f32.xlu1 %v4763_v60 }
 0xcc3   : > { %v4766_v2 = vsel %vm495_vm1, %v4758_v3, 0.0 }
 0xcc4   : > { %4767 = vadd.xlane.f32.xlu0 %v4766_v2 }
 0xcef   : > { %v4734_v7 = vpop.xlane.xlu0 %4733 }
 0xcf0   : > { %v4747_v10 = vmul.f32 0.03125, %v4734_v7 }
 0xcf2   : > { %v4753_v14 = vsub.f32 %v4720_v35, %v4747_v10  ;;  %v5376_v35 = vld [vmem:[%s6832_s6] ss:$0 sm:$0xff] }
 0xcf3   : > { %v4737_v18 = vpop.xlane.xlu0 %4736 }
 0xcf4   : > { %v4748_v11 = vmul.f32 0.03125, %v4737_v18  ;;  %v4759_v15 = vmul.f32 %v4753_v14, %v4753_v14 }
 0xcf6   : > { %v4754_v12 = vsub.f32 %v4721_v38, %v4748_v11  ;;  %v4769_v16 = vsel %vm495_vm1, %v4759_v15, 0.0  ;;  %v5871_v11 = vld [vmem:[%s6835_s9] sm:$0xff]   ;;  %v5872_v15 = vld [vmem:[%s6835_s9 + $0x8] sm:$0xff]  }
 0xcf7   : > { %v4740_v17 = vpop.xlane.xlu1 %4739  ;;  %4770 = vadd.xlane.f32.xlu1 %v4769_v16  ;;  %5814 = vmatpush3.bf16.msra.mxu1 %v5871_v11  ;;  %v5874_v16 = vld [vmem:[%s6835_s9 + $0x18] sm:$0xff]  }
 0xcf8   : > { %v4749_v19 = vmul.f32 0.03125, %v4740_v17  ;;  %v4760_v20 = vmul.f32 %v4754_v12, %v4754_v12  ;;  %5815 = vmatprep.subr.bf16.mxu1 %v6021_v1  ;;  %v5377_v17 = vld [vmem:[%s6834_s8] ss:$0 sm:$0xff] }
 0xcf9   : > { %v4743_v23 = vpop.xlane.xlu0 %4742 }
 0xcfa   : > { %v4755_v61 = vsub.f32 %v4722_v48, %v4749_v19  ;;  %v4750_v0 = vmul.f32 0.03125, %v4743_v23  ;;  %v4772_v5 = vsel %vm495_vm1, %v4760_v20, 0.0 }
 0xcfb   : > { %4773 = vadd.xlane.f32.xlu0 %v4772_v5  ;;  %5816 = vmatpush3.bf16.msra.mxu1 %v5872_v15 }
 0xcfc   : > { %v4756_v55 = vsub.f32 %v4723_v50, %v4750_v0  ;;  %v4761_v63 = vmul.f32 %v4755_v61, %v4755_v61  ;;  %5817 = vmatprep.subr.bf16.mxu1 %v6021_v1 }
 0xcfe   : > { %v4775_v57 = vsel %vm495_vm1, %v4761_v63, 0.0  ;;  %v4762_v58 = vmul.f32 %v4756_v55, %v4756_v55 }
 0xcff   : > { %4776 = vadd.xlane.f32.xlu1 %v4775_v57 }
 0xd00   : > { %v4778_v62 = vsel %vm495_vm1, %v4762_v58, 0.0 }
 0xd01   : > { %4779 = vadd.xlane.f32.xlu0 %v4778_v62 }
 0xd4f   : > { %v4765_v21 = vpop.xlane.xlu1 %4764 }
 0xd50   : > { %v4781_v22 = vmul.f32 0.03125, %v4765_v21 }
 0xd51   : > { %v4768_v24 = vpop.xlane.xlu0 %4767 }
 0xd52   : > { %v4787_v25 = vadd.f32 1e-05, %v4781_v22  ;;  %v4782_v26 = vmul.f32 0.03125, %v4768_v24 }
 0xd54   : > { %5974 = vrsqrt.f32 %v4787_v25  ;;  %v4788_v27 = vadd.f32 1e-05, %v4782_v26 }
 0xd56   : > { %5976 = vrsqrt.f32 %v4788_v27 }
 0xd5e   : > { %v5975_v28 = vpop.eup %5974 }
 0xd5f   : > { %v4799_v30 = vmul.f32 %v5975_v28, %v4751_v4 }
 0xd60   : > { %v5977_v31 = vpop.eup %5976 }
 0xd61   : > { %v4811_v32 = vmul.f32 %v5375_v29, %v4799_v30  ;;  %v4800_v33 = vmul.f32 %v5977_v31, %v4752_v56 }
 0xd63   : > { %v4812_v36 = vmul.f32 %v5375_v29, %v4800_v33  ;;  %v6717_v37 = vadd.f32 %v5376_v35, %v4811_v32 }
 0xd65   : > { %v6719_v38 = vadd.f32 %v5376_v35, %v4812_v36 }
 0xd67   : > { %v4829_v39 = vpack.c.bf16 %v6719_v38, %v6717_v37 }
 0xd69   : > { %5802 = vmatmul.mubr.msk.bf16.vlgmr.msra.gmra.mrb[60].mxu0 %vm495_vm1, %v4829_v39 }
 0xd6a   : > { %5805 = vmatprep.mubr.msk.bf16.mxu0 %vm6022_vm0, %v6021_v1 }
 0xd84   : > { %v4771_v40 = vpop.xlane.xlu1 %4770 }
 0xd85   : > { %v4783_v41 = vmul.f32 0.03125, %v4771_v40 }
 0xd87   : > { %v4789_v42 = vadd.f32 1e-05, %v4783_v41 }
 0xd88   : > { %v4774_v43 = vpop.xlane.xlu0 %4773 }
 0xd89   : > { %5978 = vrsqrt.f32 %v4789_v42  ;;  %v4784_v44 = vmul.f32 0.03125, %v4774_v43 }
 0xd8b   : > { %v4790_v45 = vadd.f32 1e-05, %v4784_v44 }
 0xd8c   : > { %v4777_v46 = vpop.xlane.xlu1 %4776 }
 0xd8d   : > { %5980 = vrsqrt.f32 %v4790_v45  ;;  %v4785_v47 = vmul.f32 0.03125, %v4777_v46 }
 0xd8e   : > { %v4780_v48 = vpop.xlane.xlu0 %4779 }
 0xd8f   : > { %v4791_v49 = vadd.f32 1e-05, %v4785_v47  ;;  %v4786_v34 = vmul.f32 0.03125, %v4780_v48 }
 0xd91   : > { %5982 = vrsqrt.f32 %v4791_v49  ;;  %v4792_v50 = vadd.f32 1e-05, %v4786_v34 }
 0xd93   : > { %v5979_v8 = vpop.eup %5978  ;;  %5984 = vrsqrt.f32 %v4792_v50 }
 0xd94   : > { %v4801_v51 = vmul.f32 %v5979_v8, %v4753_v14 }
 0xd96   : > { %v4813_v54 = vmul.f32 %v5375_v29, %v4801_v51 }
 0xd97   : > { %v5981_v52 = vpop.eup %5980 }
 0xd98   : > { %v4802_v53 = vmul.f32 %v5981_v52, %v4754_v12  ;;  %v6726_v59 = vadd.f32 %v5376_v35, %v4813_v54  ;;  %v5873_v12 = vld [vmem:[%s6835_s9 + $0x10] sm:$0xff]  }
 0xd99   : > { %5818 = vmatpush3.bf16.msra.mxu1 %v5873_v12 }
 0xd9a   : > { %v4814_v4 = vmul.f32 %v5375_v29, %v4802_v53  ;;  %5819 = vmatprep.subr.bf16.mxu1 %v6021_v1 }
 0xd9b   : > { %v5983_v9 = vpop.eup %5982 }
 0xd9c   : > { %v4803_v56 = vmul.f32 %v5983_v9, %v4755_v61  ;;  %v6728_v60 = vadd.f32 %v5376_v35, %v4814_v4 }
 0xd9d   : > { %v5985_v3 = vpop.eup %5984  ;;  %5820 = vmatpush3.bf16.msra.mxu1 %v5874_v16 }
 0xd9e   : > { %v4804_v2 = vmul.f32 %v5985_v3, %v4756_v55  ;;  %v4830_v6 = vpack.c.bf16 %v6728_v60, %v6726_v59  ;;  %v4815_v13 = vmul.f32 %v5375_v29, %v4803_v56 }
 0xda0   : > { %5806 = vmatmul.mubr.msk.bf16.gmra.mrb[64].mxu0 %vm495_vm1, %v4830_v6  ;;  %v4816_v7 = vmul.f32 %v5375_v29, %v4804_v2  ;;  %v6737_v14 = vadd.f32 %v5376_v35, %v4815_v13 }
 0xda1   : > { %5809 = vmatprep.mubr.msk.bf16.mxu0 %vm6022_vm0, %v6021_v1 }
 0xda2   : > { %v6735_v10 = vadd.f32 %v5376_v35, %v4816_v7 }
 0xda4   : > { %v4831_v18 = vpack.c.bf16 %v6735_v10, %v6737_v14 }
 0xda8   : > { %5810 = vmatmul.mubr.msk.bf16.gmra.mrb[68].mxu0 %vm495_vm1, %v4831_v18 }
 0xe3c   : > { %v4898_v19 = vpop.f32.mrb[60].mxu0 }
 0xe3d   : > { %v4899_v20 = vadd.f32 %v5377_v17, %v4898_v19  ;;  %v5803_v23 = vpop.f32.mrb[61].mxu0 }
 0xe3e   : > { %v4901_v61 = vpop.f32.mrb[62].mxu0 }
 0xe3f   : > { %v4921_v0 = vmul.f32 %v4899_v20, %v4899_v20  ;;  %v4902_v5 = vadd.f32 %v5377_v17, %v4901_v61  ;;  %v5804_v55 = vpop.f32.mrb[63].mxu0 }
 0xe41   : > { %v4927_v63 = vmul.f32 %v4921_v0, %v4899_v20  ;;  %v4922_v57 = vmul.f32 %v4902_v5, %v4902_v5 }
 0xe43   : > { %v4933_v58 = vmul.f32 0.044715, %v4927_v63  ;;  %v4928_v62 = vmul.f32 %v4922_v57, %v4902_v5 }
 0xe45   : > { %v4939_v21 = vadd.f32 %v4933_v58, %v4899_v20  ;;  %v4934_v22 = vmul.f32 0.044715, %v4928_v62 }
 0xe47   : > { %v4945_v24 = vmul.f32 0.7978846, %v4939_v21  ;;  %v4940_v25 = vadd.f32 %v4934_v22, %v4902_v5 }
 0xe49   : > { %5986 = vtanh.f32 %v4945_v24  ;;  %v4946_v26 = vmul.f32 0.7978846, %v4940_v25 }
 0xe4b   : > { %5988 = vtanh.f32 %v4946_v26 }
 0xe53   : > { %v5987_v27 = vpop.eup %5986 }
 0xe54   : > { %v4957_v28 = vadd.f32 1.0, %v5987_v27 }
 0xe55   : > { %v5989_v29 = vpop.eup %5988 }
 0xe56   : > { %v4963_v30 = vmul.f32 0.5, %v4957_v28  ;;  %v4958_v31 = vadd.f32 1.0, %v5989_v29  ;;  %v5383_v29 = vld [vmem:[%s6836_s10] ss:$0 sm:$0xff] }
 0xe58   : > { %v4964_v32 = vmul.f32 0.5, %v4958_v31  ;;  %v4969_v33 = vmul.f32 %v4963_v30, %v4899_v20 }
 0xe5a   : > { %v4970_v35 = vmul.f32 %v4964_v32, %v4902_v5 }
 0xe5c   : > { %v4975_v36 = vpack.c.bf16 %v4970_v35, %v4969_v33 }
 0xe5e   : > { %5822 = vmatmul.mubr.msk.bf16.vlgmr.msra.gmra.mrb[64].mxu1 %vm5017_vm7, %v4975_v36 }
 0xe5f   : > { %5825 = vmatprep.mubr.msk.bf16.mxu1 %vm6022_vm0, %v6021_v1 }
 0xe73   : > { %v4906_v39 = vpop.f32.mrb[64].mxu0 }
 0xe74   : > { %v4907_v40 = vadd.f32 %v5377_v17, %v4906_v39  ;;  %v5807_v41 = vpop.f32.mrb[65].mxu0 }
 0xe75   : > { %v4909_v42 = vpop.f32.mrb[66].mxu0 }
 0xe76   : > { %v4923_v43 = vmul.f32 %v4907_v40, %v4907_v40  ;;  %v4910_v44 = vadd.f32 %v5377_v17, %v4909_v42  ;;  %v5808_v45 = vpop.f32.mrb[67].mxu0 }
 0xe78   : > { %v4929_v46 = vmul.f32 %v4923_v43, %v4907_v40  ;;  %v4924_v47 = vmul.f32 %v4910_v44, %v4910_v44 }
 0xe7a   : > { %v4935_v48 = vmul.f32 0.044715, %v4929_v46  ;;  %v4930_v49 = vmul.f32 %v4924_v47, %v4910_v44 }
 0xe7b   : > { %v4914_v34 = vpop.f32.mrb[68].mxu0 }
 0xe7c   : > { %v4941_v50 = vadd.f32 %v4935_v48, %v4907_v40  ;;  %v4936_v8 = vmul.f32 0.044715, %v4930_v49  ;;  %v4915_v51 = vadd.f32 %v5377_v17, %v4914_v34  ;;  %v5811_v52 = vpop.f32.mrb[69].mxu0 }
 0xe7d   : > { %v4917_v53 = vpop.f32.mrb[70].mxu0 }
 0xe7e   : > { %v4947_v54 = vmul.f32 0.7978846, %v4941_v50  ;;  %v4942_v4 = vadd.f32 %v4936_v8, %v4910_v44  ;;  %v4925_v9 = vmul.f32 %v4915_v51, %v4915_v51  ;;  %v4918_v56 = vadd.f32 %v5377_v17, %v4917_v53  ;;  %v5812_v3 = vpop.f32.mrb[71].mxu0 }
 0xe80   : > { %5990 = vtanh.f32 %v4947_v54  ;;  %v4948_v2 = vmul.f32 0.7978846, %v4942_v4  ;;  %v4931_v6 = vmul.f32 %v4925_v9, %v4915_v51  ;;  %v4926_v13 = vmul.f32 %v4918_v56, %v4918_v56 }
 0xe82   : > { %5992 = vtanh.f32 %v4948_v2  ;;  %v4937_v7 = vmul.f32 0.044715, %v4931_v6  ;;  %v4932_v18 = vmul.f32 %v4926_v13, %v4918_v56 }
 0xe84   : > { %v4943_v11 = vadd.f32 %v4937_v7, %v4915_v51  ;;  %v4938_v15 = vmul.f32 0.044715, %v4932_v18 }
 0xe86   : > { %v4949_v12 = vmul.f32 0.7978846, %v4943_v11  ;;  %v4944_v16 = vadd.f32 %v4938_v15, %v4918_v56 }
 0xe88   : > { %5994 = vtanh.f32 %v4949_v12  ;;  %v4950_v19 = vmul.f32 0.7978846, %v4944_v16 }
 0xe8a   : > { %v5991_v20 = vpop.eup %5990  ;;  %5996 = vtanh.f32 %v4950_v19 }
 0xe8b   : > { %v4959_v23 = vadd.f32 1.0, %v5991_v20 }
 0xe8c   : > { %v5993_v61 = vpop.eup %5992 }
 0xe8d   : > { %v4965_v0 = vmul.f32 0.5, %v4959_v23  ;;  %v4960_v17 = vadd.f32 1.0, %v5993_v61 }
 0xe8f   : > { %v4966_v5 = vmul.f32 0.5, %v4960_v17  ;;  %v4971_v55 = vmul.f32 %v4965_v0, %v4907_v40 }
 0xe91   : > { %v4972_v63 = vmul.f32 %v4966_v5, %v4910_v44 }
 0xe92   : > { %v5995_v57 = vpop.eup %5994 }
 0xe93   : > { %v4961_v58 = vadd.f32 1.0, %v5995_v57  ;;  %v4976_v62 = vpack.c.bf16 %v4972_v63, %v4971_v55 }
 0xe94   : > { %v5997_v21 = vpop.eup %5996 }
 0xe95   : > { %v4967_v22 = vmul.f32 0.5, %v4961_v58  ;;  %v4962_v24 = vadd.f32 1.0, %v5997_v21  ;;  %5826 = vmatmul.mubr.msk.bf16.gmra.mrb[68].mxu1 %vm5017_vm7, %v4976_v62 }
 0xe96   : > { %5829 = vmatprep.mubr.msk.bf16.mxu1 %vm6022_vm0, %v6021_v1 }
 0xe97   : > { %v4968_v25 = vmul.f32 0.5, %v4962_v24  ;;  %v4973_v26 = vmul.f32 %v4967_v22, %v4915_v51 }
 0xe99   : > { %v4974_v27 = vmul.f32 %v4968_v25, %v4918_v56 }
 0xe9b   : > { %v4977_v28 = vpack.c.bf16 %v4974_v27, %v4973_v26 }
 0xe9d   : > { %5830 = vmatmul.mubr.msk.bf16.gmra.mrb[72].mxu1 %vm5017_vm7, %v4977_v28 }
 0xf31   : > { %v5061_v30 = vpop.f32.mrb[64].mxu1 }
 0xf32   : > { %v5062_v31 = vadd.f32 %v5383_v29, %v5061_v30  ;;  %v5823_v32 = vpop.f32.mrb[65].mxu1 }
 0xf33   : > { %v5064_v33 = vpop.f32.mrb[66].mxu1 }
 0xf34   : > { %v5084_v35 = vadd.f32 %v5062_v31, %v6717_v37  ;;  %v5065_v36 = vadd.f32 %v5383_v29, %v5064_v33  ;;  %v5824_v39 = vpop.f32.mrb[67].mxu1  ;;  %v5391_v33 = vld [vmem:[%s6837_s11] ss:$0 sm:$0xff] }
 0xf35   : > { %v5392_v39 = vld [vmem:[%s6838_s12] ss:$0 sm:$0xff] }
 0xf36   : > { %v5085_v1 = vadd.f32 %v5065_v36, %v6719_v38  ;;  %v5092_v40 = vsel %vm495_vm1, %v5084_v35, 0.0 }
 0xf37   : > { %5093 = vadd.xlane.f32.xlu1 %v5092_v40 }
 0xf38   : > { %v5095_v41 = vsel %vm495_vm1, %v5085_v1, 0.0 }
 0xf39   : > { %5096 = vadd.xlane.f32.xlu0 %v5095_v41 }
 0xf68   : > { %v5069_v42 = vpop.f32.mrb[68].mxu1 }
 0xf69   : > { %v5070_v43 = vadd.f32 %v5383_v29, %v5069_v42  ;;  %v5827_v44 = vpop.f32.mrb[69].mxu1 }
 0xf6a   : > { %v5072_v45 = vpop.f32.mrb[70].mxu1 }
 0xf6b   : > { %v5086_v46 = vadd.f32 %v5070_v43, %v6726_v59  ;;  %v5073_v47 = vadd.f32 %v5383_v29, %v5072_v45  ;;  %v5828_v48 = vpop.f32.mrb[71].mxu1 }
 0xf6d   : > { %v5087_v37 = vadd.f32 %v5073_v47, %v6728_v60  ;;  %v5098_v49 = vsel %vm495_vm1, %v5086_v46, 0.0 }
 0xf6e   : > { %5099 = vadd.xlane.f32.xlu1 %v5098_v49 }
 0xf6f   : > { %v5101_v38 = vsel %vm495_vm1, %v5087_v37, 0.0 }
 0xf70   : > { %5102 = vadd.xlane.f32.xlu0 %v5101_v38  ;;  %v5077_v34 = vpop.f32.mrb[72].mxu1 }
 0xf71   : > { %v5078_v50 = vadd.f32 %v5383_v29, %v5077_v34  ;;  %v5831_v8 = vpop.f32.mrb[73].mxu1 }
 0xf72   : > { %v5080_v51 = vpop.f32.mrb[74].mxu1 }
 0xf73   : > { %v5088_v52 = vadd.f32 %v5078_v50, %v6737_v14  ;;  %v5081_v53 = vadd.f32 %v5383_v29, %v5080_v51  ;;  %v5832_v54 = vpop.f32.mrb[75].mxu1 }
 0xf75   : > { %v5089_v59 = vadd.f32 %v5081_v53, %v6735_v10  ;;  %v5104_v4 = vsel %vm495_vm1, %v5088_v52, 0.0 }
 0xf76   : > { %5105 = vadd.xlane.f32.xlu1 %v5104_v4 }
 0xf77   : > { %v5107_v60 = vsel %vm495_vm1, %v5089_v59, 0.0 }
 0xf78   : > { %5108 = vadd.xlane.f32.xlu0 %v5107_v60 }
 0xfc4   : > { %v5094_v9 = vpop.xlane.xlu1 %5093 }
 0xfc5   : > { %v5110_v56 = vmul.f32 0.03125, %v5094_v9 }
 0xfc6   : > { %v5097_v3 = vpop.xlane.xlu0 %5096 }
 0xfc7   : > { %v5116_v2 = vsub.f32 %v5084_v35, %v5110_v56  ;;  %v5111_v6 = vmul.f32 0.03125, %v5097_v3 }
 0xfc9   : > { %v5117_v13 = vsub.f32 %v5085_v1, %v5111_v6  ;;  %v5122_v7 = vmul.f32 %v5116_v2, %v5116_v2 }
 0xfcb   : > { %v5128_v18 = vsel %vm495_vm1, %v5122_v7, 0.0  ;;  %v5123_v14 = vmul.f32 %v5117_v13, %v5117_v13 }
 0xfcc   : > { %5129 = vadd.xlane.f32.xlu1 %v5128_v18 }
 0xfcd   : > { %v5131_v11 = vsel %vm495_vm1, %v5123_v14, 0.0 }
 0xfce   : > { %5132 = vadd.xlane.f32.xlu0 %v5131_v11 }
 0xffb   : > { %v5100_v10 = vpop.xlane.xlu1 %5099 }
 0xffc   : > { %v5112_v15 = vmul.f32 0.03125, %v5100_v10 }
 0xffd   : > { %v5103_v12 = vpop.xlane.xlu0 %5102 }
 0xffe   : > { %v5118_v16 = vsub.f32 %v5086_v46, %v5112_v15  ;;  %v5113_v19 = vmul.f32 0.03125, %v5103_v12 }
0x1000   : > { %v6784_v20 = vsub.f32 %v5087_v37, %v5113_v19  ;;  %v5124_v23 = vmul.f32 %v5118_v16, %v5118_v16 }
0x1002   : > { %v5134_v61 = vsel %vm495_vm1, %v5124_v23, 0.0  ;;  %v5125_v0 = vmul.f32 %v6784_v20, %v6784_v20 }
0x1003   : > { %5135 = vadd.xlane.f32.xlu1 %v5134_v61  ;;  %v5106_v17 = vpop.xlane.xlu1 %5105 }
0x1004   : > { %v5114_v5 = vmul.f32 0.03125, %v5106_v17  ;;  %v5137_v55 = vsel %vm495_vm1, %v5125_v0, 0.0 }
0x1005   : > { %5138 = vadd.xlane.f32.xlu0 %v5137_v55  ;;  %v5109_v63 = vpop.xlane.xlu0 %5108 }
0x1006   : > { %v5120_v57 = vsub.f32 %v5088_v52, %v5114_v5  ;;  %v5115_v58 = vmul.f32 0.03125, %v5109_v63 }
0x1008   : > { %v6790_v62 = vsub.f32 %v5089_v59, %v5115_v58  ;;  %v5126_v21 = vmul.f32 %v5120_v57, %v5120_v57 }
0x100a   : > { %v5140_v22 = vsel %vm495_vm1, %v5126_v21, 0.0  ;;  %v5127_v24 = vmul.f32 %v6790_v62, %v6790_v62 }
0x100b   : > { %5141 = vadd.xlane.f32.xlu1 %v5140_v22 }
0x100c   : > { %v5143_v25 = vsel %vm495_vm1, %v5127_v24, 0.0 }
0x100d   : > { %5144 = vadd.xlane.f32.xlu0 %v5143_v25 }
0x1059   : > { %v5130_v26 = vpop.xlane.xlu1 %5129 }
0x105a   : > { %v5146_v27 = vmul.f32 0.03125, %v5130_v26 }
0x105b   : > { %v5133_v28 = vpop.xlane.xlu0 %5132 }
0x105c   : > { %v5152_v29 = vadd.f32 1e-05, %v5146_v27  ;;  %v5147_v30 = vmul.f32 0.03125, %v5133_v28 }
0x105e   : > { %5998 = vrsqrt.f32 %v5152_v29  ;;  %v5153_v31 = vadd.f32 1e-05, %v5147_v30 }
0x1060   : > { %6000 = vrsqrt.f32 %v5153_v31 }
0x1068   : > { %v5999_v32 = vpop.eup %5998 }
0x1069   : > { %v5164_v35 = vmul.f32 %v5999_v32, %v5116_v2 }
0x106a   : > { %v6001_v36 = vpop.eup %6000 }
0x106b   : > { %v5176_v1 = vmul.f32 %v5391_v33, %v5164_v35  ;;  %v5165_v40 = vmul.f32 %v6001_v36, %v5117_v13 }
0x106d   : > { %v5188_v41 = vadd.f32 %v5392_v39, %v5176_v1  ;;  %v5177_v42 = vmul.f32 %v5391_v33, %v5165_v40 }
0x106f   : > { %v5401_v43 = vpack.c.bf16 %v5188_v41, %v5188_v41  ;;  %v5189_v44 = vadd.f32 %v5392_v39, %v5177_v42 }
0x1071   : > { %5219 = vst.msk [vmem:[%s6807_s27] sm:$0xf] %vm5218_vm8, %v5401_v43  ;;  %v5402_v45 = vpack.c.bf16 %v5189_v44, %v5189_v44 }
0x1073   : > { %5220 = vst.msk [vmem:[%s6807_s27 + $0x4] sm:$0xf] %vm5218_vm8, %v5402_v45 }
0x1090   : > { %v5136_v46 = vpop.xlane.xlu1 %5135 }
0x1091   : > { %v5148_v47 = vmul.f32 0.03125, %v5136_v46 }
0x1092   : > { %v5139_v48 = vpop.xlane.xlu0 %5138 }
0x1093   : > { %v5154_v37 = vadd.f32 1e-05, %v5148_v47  ;;  %v5149_v49 = vmul.f32 0.03125, %v5139_v48 }
0x1095   : > { %6002 = vrsqrt.f32 %v5154_v37  ;;  %v5155_v38 = vadd.f32 1e-05, %v5149_v49 }
0x1097   : > { %6004 = vrsqrt.f32 %v5155_v38 }
0x1098   : > { %v5142_v34 = vpop.xlane.xlu1 %5141 }
0x1099   : > { %v5150_v50 = vmul.f32 0.03125, %v5142_v34 }
0x109a   : > { %v5145_v8 = vpop.xlane.xlu0 %5144 }
0x109b   : > { %v5156_v51 = vadd.f32 1e-05, %v5150_v50  ;;  %v5151_v52 = vmul.f32 0.03125, %v5145_v8 }
0x109d   : > { %6006 = vrsqrt.f32 %v5156_v51  ;;  %v5157_v53 = vadd.f32 1e-05, %v5151_v52 }
0x109f   : > { %v6003_v54 = vpop.eup %6002  ;;  %6008 = vrsqrt.f32 %v5157_v53 }
0x10a0   : > { %v5166_v59 = vmul.f32 %v6003_v54, %v5118_v16 }
0x10a1   : > { %v6005_v4 = vpop.eup %6004 }
0x10a2   : > { %v5178_v60 = vmul.f32 %v5391_v33, %v5166_v59  ;;  %v5167_v9 = vmul.f32 %v6005_v4, %v6784_v20 }
0x10a4   : > { %v5190_v56 = vadd.f32 %v5392_v39, %v5178_v60  ;;  %v5179_v3 = vmul.f32 %v5391_v33, %v5167_v9 }
0x10a6   : > { %v5403_v2 = vpack.c.bf16 %v5190_v56, %v5190_v56  ;;  %v5191_v6 = vadd.f32 %v5392_v39, %v5179_v3 }
0x10a7   : > { %v6007_v13 = vpop.eup %6006 }
0x10a8   : > { %5221 = vst.msk [vmem:[%s6807_s27 + $0x8] sm:$0xf] %vm5218_vm8, %v5403_v2  ;;  %v5404_v7 = vpack.c.bf16 %v5191_v6, %v5191_v6  ;;  %v5168_v18 = vmul.f32 %v6007_v13, %v5120_v57 }
0x10a9   : > { %v6009_v14 = vpop.eup %6008 }
0x10aa   : > { %5222 = vst.msk [vmem:[%s6807_s27 + $0xc] sm:$0xf] %vm5218_vm8, %v5404_v7  ;;  %v5180_v11 = vmul.f32 %v5391_v33, %v5168_v18  ;;  %v5169_v10 = vmul.f32 %v6009_v14, %v6790_v62 }
0x10ac   : > { %v5192_v15 = vadd.f32 %v5392_v39, %v5180_v11  ;;  %v5181_v12 = vmul.f32 %v5391_v33, %v5169_v10 }
0x10ae   : > { %v5405_v16 = vpack.c.bf16 %v5192_v15, %v5192_v15  ;;  %v5193_v19 = vadd.f32 %v5392_v39, %v5181_v12 }
0x10b0   : > { %5223 = vst.msk [vmem:[%s6807_s27 + $0x10] sm:$0xf] %vm5218_vm8, %v5405_v16  ;;  %v5406_v20 = vpack.c.bf16 %v5193_v19, %v5193_v19 }
0x10b2   : > { %5224 = vst.msk [vmem:[%s6807_s27 + $0x14] sm:$0xf] %vm5218_vm8, %v5406_v20 }
0x10b3 PF: > { %s23_s25 = sadd.s32 1, %s6019_s25  }
0x10b4   : > { %p20_p4 = scmp.ge.s32.totalorder %s23_s25, 4  }
0x10b6   :  { %22 = sbr.rel (!%p20_p4) target bundleno = 1 (0x1), region = 102 }

</bundles_post_ra>
